<compile_context>
chip_gen: v7x
topology: tpu7x:2x2x1
jax: 0.10.0
libtpu: 0.0.40
codegen_flags: <defaults>
</compile_context>

<pallas_src>
import functools

import jax
import jax.numpy as jnp
from jax.experimental import pallas as pl
from jax.experimental.pallas import tpu as pltpu


def _law_attn_kernel(qpb_ref, v_ref, lap_ref, lac_ref, lan_ref,
                     wv_ref, wc_ref, fcw_ref, fcb_ref,
                     ctx_ref, attn_ref, *,
                     smoothing: bool, tanh_bf16: bool, context_via_mxu: bool):
    TB, L, D = v_ref.shape
    A = wv_ref.shape[1]

    v = v_ref[...]                                               # (TB, L, D), bf16 or f32

    # --- value projection: one (TB*L, D) @ (D, A) MXU matmul, f32 accumulation ---
    vp = jnp.dot(v.reshape(TB * L, D), wv_ref[...],
                 preferred_element_type=jnp.float32).reshape(TB, L, A)

    # --- location conv (k=3, pad=1) as three broadcast FMAs ---
    wc = wc_ref[...]                                             # (3, A), f32
    w_prev = wc[0:1].reshape(1, 1, A)
    w_cur = wc[1:2].reshape(1, 1, A)
    w_next = wc[2:3].reshape(1, 1, A)
    qpb = qpb_ref[...][:, None, :]                               # (TB, 1, A): q_proj + conv bias + bias

    # energy pre-activation, written as one chained FMA expression over (TB, L, A).
    pre = vp + (lap_ref[...][:, :, None] * w_prev
                + (lac_ref[...][:, :, None] * w_cur
                   + (lan_ref[...][:, :, None] * w_next + qpb)))

    if tanh_bf16:
        # EUP relief on v6e/v7x (bf16 EUP); keep False on v5e.
        th = jnp.tanh(pre.astype(jnp.bfloat16)).astype(jnp.float32)
    else:
        th = jnp.tanh(pre)

    # --- fc: VPU multiply + lane reduction over A (no N=1 matmul, no transpose) ---
    e = jnp.sum(th * fcw_ref[...].reshape(1, 1, A), axis=-1) + fcb_ref[...]   # (TB, L)

    # --- normalization over v_len ---
    if smoothing:
        s = jax.nn.sigmoid(e)
        attn = s * pl.reciprocal(jnp.sum(s, axis=-1, keepdims=True), approx=True)
    else:
        m = jnp.max(e, axis=-1, keepdims=True)
        p = jnp.exp(e - m)
        attn = p * pl.reciprocal(jnp.sum(p, axis=-1, keepdims=True), approx=True)

    attn_ref[...] = attn.astype(attn_ref.dtype)                  # dense (TB, L) store

    # --- context = attn @ value ---
    if context_via_mxu:
        # v6e/v7x: MXU has slack; keep the tiny batched matmul on the MXU.
        ctx = jnp.einsum("bql,bld->bqd", attn[:, None, :].astype(v.dtype), v,
                         preferred_element_type=jnp.float32).reshape(TB, D)
    else:
        # v5e: the MXU is near its roofline; use a VPU multiply + sublane reduce.
        ctx = jnp.sum(attn[:, :, None] * v.astype(jnp.float32), axis=1)
    ctx_ref[...] = ctx.astype(ctx_ref.dtype)                     # dense (TB, D) store


def _round_up(x: int, m: int) -> int:
    return (x + m - 1) // m * m


def _auto_tb(batch, L, Dp, Ap, v_bytes, vmem_budget):
    """Largest batch tile (multiple of 8) whose estimated VMEM footprint fits."""
    cap = max(8, min(64, _round_up(batch, 8)))
    tb = 8
    for cand in range(cap, 7, -8):
        value_io = 2 * cand * L * Dp * v_bytes            # double-buffered value blocks
        temps = 4 * cand * L * Ap * 4                     # vp / pre / tanh / fc-product (f32)
        weights = 2 * Dp * Ap * v_bytes + 8 * Ap * 4      # wv (worst-case 2 bufs) + small consts
        small_io = 4 * cand * (Ap + 4 * L + Dp) * 4       # qpb, la tensors, ctx/attn blocks
        if value_io + temps + weights + small_io <= vmem_budget:
            tb = cand
            break
    # v7x has 2 TensorCores sharing the grid: prefer >= 2 grid steps when possible.
    while tb > 8 and -(-_round_up(batch, 8) // tb) < 2:
        tb -= 8
    return tb
    # TODO(synk): for very large v_len * attn_dim, additionally tile over v_len with
    # online softmax instead of relying on the minimum tb=8 tile.


def location_aware_attention(query, value, last_attn, params, *,
                             smoothing: bool = False,
                             use_bf16: bool = True,
                             tanh_bf16: bool = False,
                             context_via_mxu: bool = True,
                             tb=None):
    """Fused LocationAwareAttention forward.

    params = (wq, wv, wc, bconv, bias, fc_w, fc_b):
      wq, wv : (decoder_dim, attn_dim)  query/value projection weights (pre-transposed)
      wc     : (3, attn_dim)            Conv1d weight (attn_dim, 1, 3) -> (3, attn_dim)
      bconv  : (1, attn_dim)            Conv1d bias
      bias   : (1, attn_dim)            self.bias
      fc_w   : (1, attn_dim)            fc weight (PyTorch (out, in) layout)
      fc_b   : (1, 1)                   fc bias

    use_bf16        : bf16 value / value-proj MXU path (default; halves HBM+VMEM traffic).
    tanh_bf16       : bf16 tanh (EUP relief on v6e/v7x; keep False on v5e).
    context_via_mxu : keep the context matmul on the MXU (default, good for v6e/v7x);
                      set False on v5e to use a VPU multiply + reduce instead.
    """
    wq, wv, wc, bconv, bias, fc_w, fc_b = params
    B, q_len, D = query.shape
    _, L, Dv = value.shape
    A = wq.shape[1]
    assert q_len == 1 and Dv == D, "decoder query must have q_len == 1"

    if last_attn is None:
        last_attn = jnp.zeros((B, L), jnp.float32)

    # ---- hoisted / folded XLA-side work --------------------------------------
    # query projection + conv bias + additive bias, one row per batch element (f32).
    qpb = (jnp.dot(query[:, 0, :].astype(jnp.float32), wq.astype(jnp.float32))
           + (bconv + bias).reshape(1, A).astype(jnp.float32))            # (B, A)
    # pre-shifted previous-alignment rows for the k=3 location conv (padding=1).
    la = last_attn.astype(jnp.float32).reshape(B, L)
    la_prev = jnp.pad(la, ((0, 0), (1, 0)))[:, :L]                        # la[t-1]
    la_next = jnp.pad(la, ((0, 0), (0, 1)))[:, 1:]                        # la[t+1]

    # ---- pad feature dims to lane/MXU-aligned multiples of 128 ---------------
    Dp, Ap = _round_up(D, 128), _round_up(A, 128)
    value_p = jnp.pad(value, ((0, 0), (0, 0), (0, Dp - D)))
    wv_p = jnp.pad(wv, ((0, Dp - D), (0, Ap - A)))
    wc_p = jnp.pad(wc, ((0, 0), (0, Ap - A))).astype(jnp.float32)
    fcw_p = jnp.pad(fc_w, ((0, 0), (0, Ap - A))).astype(jnp.float32)
    fcb = fc_b.reshape(1, 1).astype(jnp.float32)
    qpb = jnp.pad(qpb, ((0, 0), (0, Ap - A)))

    v_dtype = jnp.bfloat16 if use_bf16 else jnp.float32
    value_p = value_p.astype(v_dtype)
    wv_p = wv_p.astype(v_dtype)

    # ---- per-generation VMEM budget -> batch tile -----------------------------
    try:
        vmem_cap = int(pltpu.get_tpu_info().vmem_capacity_bytes)
    except Exception:
        vmem_cap = 64 * 1024 * 1024                       # v7x-safe fallback
    vmem_limit = min(vmem_cap * 3 // 4, 100 * 1024 * 1024)  # ~96 MiB v5e/v6e, ~48 MiB v7x
    if tb is None:
        tb = _auto_tb(B, L, Dp, Ap, jnp.dtype(v_dtype).itemsize, vmem_limit)
    tb = max(8, _round_up(int(tb), 8))                    # keep batch tiles sublane-dense

    n_blocks = -(-B // tb)
    b_pad = n_blocks * tb
    if b_pad != B:
        pad = b_pad - B
        qpb = jnp.pad(qpb, ((0, pad), (0, 0)))
        value_p = jnp.pad(value_p, ((0, pad), (0, 0), (0, 0)))
        la = jnp.pad(la, ((0, pad), (0, 0)))
        la_prev = jnp.pad(la_prev, ((0, pad), (0, 0)))
        la_next = jnp.pad(la_next, ((0, pad), (0, 0)))

    kernel = functools.partial(_law_attn_kernel, smoothing=smoothing,
                               tanh_bf16=tanh_bf16, context_via_mxu=context_via_mxu)
    out_shapes = (
        jax.ShapeDtypeStruct((b_pad, Dp), jnp.float32),   # context
        jax.ShapeDtypeStruct((b_pad, L), jnp.float32),    # attention
    )

    def _run(weight_buffers):
        def const_spec(shape):
            kwargs = {}
            if weight_buffers is not None:
                kwargs["pipeline_mode"] = pl.Buffered(weight_buffers)
            return pl.BlockSpec(shape, lambda b: (0,) * len(shape), **kwargs)

        grid_spec = pltpu.PrefetchScalarGridSpec(
            num_scalar_prefetch=0,
            grid=(n_blocks,),
            in_specs=[
                pl.BlockSpec((tb, Ap), lambda b: (b, 0)),        # q_proj + biases
                pl.BlockSpec((tb, L, Dp), lambda b: (b, 0, 0)),  # value
                pl.BlockSpec((tb, L), lambda b: (b, 0)),         # last_attn[t-1]
                pl.BlockSpec((tb, L), lambda b: (b, 0)),         # last_attn[t]
                pl.BlockSpec((tb, L), lambda b: (b, 0)),         # last_attn[t+1]
                const_spec((Dp, Ap)),                            # value_proj weight
                const_spec((3, Ap)),                             # location conv weight
                const_spec((1, Ap)),                             # fc weight
                const_spec((1, 1)),                              # fc bias
            ],
            out_specs=[
                pl.BlockSpec((tb, Dp), lambda b: (b, 0)),        # context
                pl.BlockSpec((tb, L), lambda b: (b, 0)),         # attention
            ],
        )
        return pl.pallas_call(
            kernel,
            out_shape=out_shapes,
            grid_spec=grid_spec,
            compiler_params=pltpu.CompilerParams(
                dimension_semantics=("parallel",),
                vmem_limit_bytes=int(vmem_limit),
            ),
        )(qpb, value_p, la_prev, la, la_next, wv_p, wc_p, fcw_p, fcb)

    try:
        # Grid-invariant weights need no double buffer -> halve their VMEM footprint.
        ctx, attn = _run(1)
    except Exception:
        # pl.Buffered(1) not supported by this JAX build; fall back to default buffering.
        ctx, attn = _run(None)

    return ctx[:B, :D][:, None, :], attn[:B]


def reference(query, value, last_attn, params, smoothing=False):
    """Plain-JAX re-implementation of the PyTorch forward."""
    wq, wv, wc, bconv, bias, fc_w, fc_b = params
    L = value.shape[1]
    la_pad = jnp.pad(last_attn, ((0, 0), (1, 1)))
    la3 = jnp.stack([la_pad[:, :-2], la_pad[:, 1:-1], la_pad[:, 2:]], axis=-1)  # (B,L,3)
    loc = jnp.einsum("blk,ka->bla", la3, wc) + bconv
    qp = jnp.einsum("bqd,da->bqa", query, wq)
    vp = jnp.einsum("bld,da->bla", value, wv)
    e = jnp.einsum("bla,a->bl", jnp.tanh(qp + vp + loc + bias), fc_w[0]) + fc_b[0, 0]
    if smoothing:
        s = jax.nn.sigmoid(e)
        attn = s / jnp.sum(s, axis=-1, keepdims=True)
    else:
        attn = jax.nn.softmax(e, axis=-1)
    ctx = jnp.einsum("bl,bld->bd", attn, value)[:, None, :]                     # (B, 1, D)
    return ctx, attn


if __name__ == "__main__":
    B, q_len, L = 12, 1, 8
    decoder_dim, attn_dim = 32, 32

    key = jax.random.PRNGKey(0)
    ks = jax.random.split(key, 10)

    # Deterministic synthetic parameters (shapes follow the nn.Module __init__).
    wq = jax.random.uniform(ks[0], (decoder_dim, attn_dim), jnp.float32, -0.1, 0.1)
    wv = jax.random.uniform(ks[1], (decoder_dim, attn_dim), jnp.float32, -0.1, 0.1)
    wc = jax.random.uniform(ks[2], (3, attn_dim), jnp.float32, -0.1, 0.1)
    bconv = jax.random.uniform(ks[3], (1, attn_dim), jnp.float32, -0.1, 0.1)
    bias = jax.random.uniform(ks[4], (1, attn_dim), jnp.float32, -0.1, 0.1)
    fc_w = jax.random.uniform(ks[5], (1, attn_dim), jnp.float32, -0.1, 0.1)
    fc_b = jax.random.uniform(ks[6], (1, 1), jnp.float32, -0.1, 0.1)
    params = (wq, wv, wc, bconv, bias, fc_w, fc_b)

    query = jax.random.normal(ks[7], (B, q_len, decoder_dim), jnp.float32)
    value = jax.random.normal(ks[8], (B, L, decoder_dim), jnp.float32)
    last_attn = jax.nn.softmax(jax.random.normal(ks[9], (B, L), jnp.float32), axis=-1)

    ctx_ref, attn_ref = reference(query, value, last_attn, params)

    # Default bf16 path; auto tb (8) exercises the multi-block grid and batch padding (12 -> 16).
    ctx, attn = location_aware_attention(query, value, last_attn, params)
    jax.block_until_ready((ctx, attn))
    assert ctx.shape == (B, 1, decoder_dim) and attn.shape == (B, L)
    assert jnp.allclose(ctx, ctx_ref, atol=5e-2, rtol=5e-2), "context mismatch (bf16)"
    assert jnp.allclose(attn, attn_ref, atol=5e-2, rtol=5e-2), "attention mismatch (bf16)"

    # Full-precision path + VPU context (v5e-style configuration), tight tolerance.
    ctx32, attn32 = location_aware_attention(query, value, last_attn, params,
                                             use_bf16=False, context_via_mxu=False)
    jax.block_until_ready((ctx32, attn32))
    assert jnp.allclose(ctx32, ctx_ref, atol=5e-3, rtol=5e-3), "context mismatch (f32)"
    assert jnp.allclose(attn32, attn_ref, atol=5e-3, rtol=5e-3), "attention mismatch (f32)"

    # Smoothing branch.
    ctx_s, attn_s = location_aware_attention(query, value, last_attn, params,
                                             use_bf16=False, smoothing=True)
    ctx_sr, attn_sr = reference(query, value, last_attn, params, smoothing=True)
    jax.block_until_ready((ctx_s, attn_s))
    assert jnp.allclose(ctx_s, ctx_sr, atol=5e-3, rtol=5e-3), "context mismatch (smoothing)"
    assert jnp.allclose(attn_s, attn_sr, atol=5e-3, rtol=5e-3), "attention mismatch (smoothing)"

    print("KERNEL_OK")
</pallas_src>

<mosaic_0001>
module attributes {stable_mosaic.version = 11 : i64} {
  func.func @_law_attn_kernel(%arg0: i32, %arg1: memref<8x128xf32, #tpu.memory_space<vmem>>, %arg2: memref<8x8x128xbf16, #tpu.memory_space<vmem>>, %arg3: memref<8x8xf32, #tpu.memory_space<vmem>>, %arg4: memref<8x8xf32, #tpu.memory_space<vmem>>, %arg5: memref<8x8xf32, #tpu.memory_space<vmem>>, %arg6: memref<128x128xbf16, #tpu.memory_space<vmem>>, %arg7: memref<3x128xf32, #tpu.memory_space<vmem>>, %arg8: memref<1x128xf32, #tpu.memory_space<vmem>>, %arg9: memref<1x1xf32, #tpu.memory_space<vmem>>, %arg10: memref<8x128xf32, #tpu.memory_space<vmem>>, %arg11: memref<8x8xf32, #tpu.memory_space<vmem>>) attributes {dimension_semantics = [#tpu.dimension_semantics<parallel>], iteration_bounds = array<i64: 2>, scalar_prefetch = 0 : i64, scratch_operands = 0 : i64, tpu.core_type = #tpu.core_type<tc>, window_params = [{transform_indices = @transform_0, window_bounds = array<i64: 8, 128>}, {transform_indices = @transform_1, window_bounds = array<i64: 8, 8, 128>}, {transform_indices = @transform_2, window_bounds = array<i64: 8, 8>}, {transform_indices = @transform_3, window_bounds = array<i64: 8, 8>}, {transform_indices = @transform_4, window_bounds = array<i64: 8, 8>}, {pipeline_mode = #tpu.pipeline_mode<synchronous>, transform_indices = @transform_5, window_bounds = array<i64: 128, 128>}, {pipeline_mode = #tpu.pipeline_mode<synchronous>, transform_indices = @transform_6, window_bounds = array<i64: 3, 128>}, {pipeline_mode = #tpu.pipeline_mode<synchronous>, transform_indices = @transform_7, window_bounds = array<i64: 1, 128>}, {pipeline_mode = #tpu.pipeline_mode<synchronous>, transform_indices = @transform_8, window_bounds = array<i64: 1, 1>}, {transform_indices = @transform_9, window_bounds = array<i64: 8, 128>}, {transform_indices = @transform_10, window_bounds = array<i64: 8, 8>}]} {
    %c0 = arith.constant 0 : index
    %c0_0 = arith.constant 0 : index
    %c0_1 = arith.constant 0 : index
    %0 = vector.load %arg2[%c0, %c0_0, %c0_1] : memref<8x8x128xbf16, #tpu.memory_space<vmem>>, vector<8x8x128xbf16>
    %1 = vector.shape_cast %0 : vector<8x8x128xbf16> to vector<64x128xbf16>
    %c0_2 = arith.constant 0 : index
    %c0_3 = arith.constant 0 : index
    %2 = vector.load %arg6[%c0_2, %c0_3] : memref<128x128xbf16, #tpu.memory_space<vmem>>, vector<128x128xbf16>
    %cst = arith.constant dense<0.000000e+00> : vector<64x128xf32>
    %3 = tpu.matmul %1, %2, %cst {dimension_numbers = #tpu.dot_dimension_numbers<[1], [0], [0], [1], [0, 0, 1, 1], [], []>} : vector<64x128xbf16>, vector<128x128xbf16>, vector<64x128xf32> -> vector<64x128xf32>
    %4 = vector.shape_cast %3 : vector<64x128xf32> to vector<8x8x128xf32>
    %c0_4 = arith.constant 0 : index
    %c0_5 = arith.constant 0 : index
    %5 = vector.load %arg7[%c0_4, %c0_5] : memref<3x128xf32, #tpu.memory_space<vmem>>, vector<3x128xf32>
    %6 = vector.extract_strided_slice %5 {offsets = [0, 0], sizes = [1, 128], strides = [1, 1]} : vector<3x128xf32> to vector<1x128xf32>
    %7 = vector.shape_cast %6 : vector<1x128xf32> to vector<1x1x128xf32>
    %8 = vector.extract_strided_slice %5 {offsets = [1, 0], sizes = [1, 128], strides = [1, 1]} : vector<3x128xf32> to vector<1x128xf32>
    %9 = vector.shape_cast %8 : vector<1x128xf32> to vector<1x1x128xf32>
    %10 = vector.extract_strided_slice %5 {offsets = [2, 0], sizes = [1, 128], strides = [1, 1]} : vector<3x128xf32> to vector<1x128xf32>
    %11 = vector.shape_cast %10 : vector<1x128xf32> to vector<1x1x128xf32>
    %c0_6 = arith.constant 0 : index
    %c0_7 = arith.constant 0 : index
    %12 = vector.load %arg1[%c0_6, %c0_7] : memref<8x128xf32, #tpu.memory_space<vmem>>, vector<8x128xf32>
    %13 = vector.shape_cast %12 : vector<8x128xf32> to vector<8x1x128xf32>
    %c0_8 = arith.constant 0 : index
    %c0_9 = arith.constant 0 : index
    %14 = vector.load %arg3[%c0_8, %c0_9] : memref<8x8xf32, #tpu.memory_space<vmem>>, vector<8x8xf32>
    %15 = vector.shape_cast %14 : vector<8x8xf32> to vector<8x8x1xf32>
    %16 = vector.broadcast %15 : vector<8x8x1xf32> to vector<8x8x128xf32>
    %17 = vector.broadcast %7 : vector<1x1x128xf32> to vector<8x8x128xf32>
    %18 = arith.mulf %16, %17 : vector<8x8x128xf32>
    %c0_10 = arith.constant 0 : index
    %c0_11 = arith.constant 0 : index
    %19 = vector.load %arg4[%c0_10, %c0_11] : memref<8x8xf32, #tpu.memory_space<vmem>>, vector<8x8xf32>
    %20 = vector.shape_cast %19 : vector<8x8xf32> to vector<8x8x1xf32>
    %21 = vector.broadcast %20 : vector<8x8x1xf32> to vector<8x8x128xf32>
    %22 = vector.broadcast %9 : vector<1x1x128xf32> to vector<8x8x128xf32>
    %23 = arith.mulf %21, %22 : vector<8x8x128xf32>
    %c0_12 = arith.constant 0 : index
    %c0_13 = arith.constant 0 : index
    %24 = vector.load %arg5[%c0_12, %c0_13] : memref<8x8xf32, #tpu.memory_space<vmem>>, vector<8x8xf32>
    %25 = vector.shape_cast %24 : vector<8x8xf32> to vector<8x8x1xf32>
    %26 = vector.broadcast %25 : vector<8x8x1xf32> to vector<8x8x128xf32>
    %27 = vector.broadcast %11 : vector<1x1x128xf32> to vector<8x8x128xf32>
    %28 = arith.mulf %26, %27 : vector<8x8x128xf32>
    %29 = vector.broadcast %13 : vector<8x1x128xf32> to vector<8x8x128xf32>
    %30 = arith.addf %28, %29 : vector<8x8x128xf32>
    %31 = arith.addf %23, %30 : vector<8x8x128xf32>
    %32 = arith.addf %18, %31 : vector<8x8x128xf32>
    %33 = arith.addf %4, %32 : vector<8x8x128xf32>
    %34 = math.tanh %33 : vector<8x8x128xf32>
    %c0_14 = arith.constant 0 : index
    %c0_15 = arith.constant 0 : index
    %35 = vector.load %arg8[%c0_14, %c0_15] : memref<1x128xf32, #tpu.memory_space<vmem>>, vector<1x128xf32>
    %36 = vector.shape_cast %35 : vector<1x128xf32> to vector<1x1x128xf32>
    %37 = vector.broadcast %36 : vector<1x1x128xf32> to vector<8x8x128xf32>
    %38 = arith.mulf %34, %37 : vector<8x8x128xf32>
    %cst_16 = arith.constant dense<0.000000e+00> : vector<8x8xf32>
    %39 = vector.multi_reduction <add>, %38, %cst_16 [2] : vector<8x8x128xf32> to vector<8x8xf32>
    %c0_17 = arith.constant 0 : index
    %c0_18 = arith.constant 0 : index
    %40 = vector.load %arg9[%c0_17, %c0_18] : memref<1x1xf32, #tpu.memory_space<vmem>>, vector<1x1xf32>
    %41 = vector.broadcast %40 : vector<1x1xf32> to vector<8x8xf32>
    %42 = arith.addf %39, %41 : vector<8x8xf32>
    %cst_19 = arith.constant dense<0xFF800000> : vector<8xf32>
    %43 = vector.multi_reduction <maximumf>, %42, %cst_19 [1] : vector<8x8xf32> to vector<8xf32>
    %44 = vector.shape_cast %43 : vector<8xf32> to vector<8x1xf32>
    %45 = vector.broadcast %44 : vector<8x1xf32> to vector<8x8xf32>
    %46 = arith.subf %42, %45 : vector<8x8xf32>
    %47 = math.exp %46 : vector<8x8xf32>
    %cst_20 = arith.constant dense<0.000000e+00> : vector<8xf32>
    %48 = vector.multi_reduction <add>, %47, %cst_20 [1] : vector<8x8xf32> to vector<8xf32>
    %49 = vector.shape_cast %48 : vector<8xf32> to vector<8x1xf32>
    %50 = tpu.reciprocal %49 {approx = true} : vector<8x1xf32> -> vector<8x1xf32>
    %51 = vector.broadcast %50 : vector<8x1xf32> to vector<8x8xf32>
    %52 = arith.mulf %47, %51 : vector<8x8xf32>
    %c0_21 = arith.constant 0 : index
    %c0_22 = arith.constant 0 : index
    %53 = vector.load %arg11[%c0_21, %c0_22] : memref<8x8xf32, #tpu.memory_space<vmem>>, vector<8x8xf32>
    tpu.vector_store %arg11[%c0_21, %c0_22], %52 {strides = array<i32>} : memref<8x8xf32, #tpu.memory_space<vmem>>, vector<8x8xf32>,
    %54 = vector.shape_cast %52 : vector<8x8xf32> to vector<8x1x8xf32>
    %55 = arith.truncf %54 : vector<8x1x8xf32> to vector<8x1x8xbf16>
    "tpu.trace_start"() <{level = 10 : i32, message = "bql,bld->bqd"}> : () -> ()
    %cst_23 = arith.constant dense<0.000000e+00> : vector<8x1x128xf32>
    %56 = tpu.matmul %55, %0, %cst_23 {dimension_numbers = #tpu.dot_dimension_numbers<[2], [1], [1], [2], [0, 0, 0, 1, 1, 2], [0], [0]>} : vector<8x1x8xbf16>, vector<8x8x128xbf16>, vector<8x1x128xf32> -> vector<8x1x128xf32>
    "tpu.trace_stop"() : () -> ()
    %57 = vector.shape_cast %56 : vector<8x1x128xf32> to vector<8x128xf32>
    %c0_24 = arith.constant 0 : index
    %c0_25 = arith.constant 0 : index
    %58 = vector.load %arg10[%c0_24, %c0_25] : memref<8x128xf32, #tpu.memory_space<vmem>>, vector<8x128xf32>
    tpu.vector_store %arg10[%c0_24, %c0_25], %57 {strides = array<i32>} : memref<8x128xf32, #tpu.memory_space<vmem>>, vector<8x128xf32>,
    return
  }
  func.func @transform_0(%arg0: i32) -> (i32, i32) {
    %c0_i32 = arith.constant 0 : i32
    %c0_i32_0 = arith.constant 0 : i32
    return %arg0, %c0_i32 : i32, i32
  }
  func.func @transform_1(%arg0: i32) -> (i32, i32, i32) {
    %c0_i32 = arith.constant 0 : i32
    %c0_i32_0 = arith.constant 0 : i32
    %c0_i32_1 = arith.constant 0 : i32
    return %arg0, %c0_i32, %c0_i32_0 : i32, i32, i32
  }
  func.func @transform_2(%arg0: i32) -> (i32, i32) {
    %c0_i32 = arith.constant 0 : i32
    %c0_i32_0 = arith.constant 0 : i32
    return %arg0, %c0_i32 : i32, i32
  }
  func.func @transform_3(%arg0: i32) -> (i32, i32) {
    %c0_i32 = arith.constant 0 : i32
    %c0_i32_0 = arith.constant 0 : i32
    return %arg0, %c0_i32 : i32, i32
  }
  func.func @transform_4(%arg0: i32) -> (i32, i32) {
    %c0_i32 = arith.constant 0 : i32
    %c0_i32_0 = arith.constant 0 : i32
    return %arg0, %c0_i32 : i32, i32
  }
  func.func @transform_5(%arg0: i32) -> (i32, i32) {
    %c0_i32 = arith.constant 0 : i32
    %c0_i32_0 = arith.constant 0 : i32
    %c0_i32_1 = arith.constant 0 : i32
    return %c0_i32, %c0_i32_0 : i32, i32
  }
  func.func @transform_6(%arg0: i32) -> (i32, i32) {
    %c0_i32 = arith.constant 0 : i32
    %c0_i32_0 = arith.constant 0 : i32
    %c0_i32_1 = arith.constant 0 : i32
    return %c0_i32, %c0_i32_0 : i32, i32
  }
  func.func @transform_7(%arg0: i32) -> (i32, i32) {
    %c0_i32 = arith.constant 0 : i32
    %c0_i32_0 = arith.constant 0 : i32
    %c0_i32_1 = arith.constant 0 : i32
    return %c0_i32, %c0_i32_0 : i32, i32
  }
  func.func @transform_8(%arg0: i32) -> (i32, i32) {
    %c0_i32 = arith.constant 0 : i32
    %c0_i32_0 = arith.constant 0 : i32
    %c0_i32_1 = arith.constant 0 : i32
    return %c0_i32, %c0_i32_0 : i32, i32
  }
  func.func @transform_9(%arg0: i32) -> (i32, i32) {
    %c0_i32 = arith.constant 0 : i32
    %c0_i32_0 = arith.constant 0 : i32
    return %arg0, %c0_i32 : i32, i32
  }
  func.func @transform_10(%arg0: i32) -> (i32, i32) {
    %c0_i32 = arith.constant 0 : i32
    %c0_i32_0 = arith.constant 0 : i32
    return %arg0, %c0_i32 : i32, i32
  }
}

module attributes {stable_mosaic.version = 11 : i64} {
  func.func @_law_attn_kernel(%arg0: i32, %arg1: memref<8x128xf32, #tpu.memory_space<vmem>>, %arg2: memref<8x8x128xbf16, #tpu.memory_space<vmem>>, %arg3: memref<8x8xf32, #tpu.memory_space<vmem>>, %arg4: memref<8x8xf32, #tpu.memory_space<vmem>>, %arg5: memref<8x8xf32, #tpu.memory_space<vmem>>, %arg6: memref<128x128xbf16, #tpu.memory_space<vmem>>, %arg7: memref<3x128xf32, #tpu.memory_space<vmem>>, %arg8: memref<1x128xf32, #tpu.memory_space<vmem>>, %arg9: memref<1x1xf32, #tpu.memory_space<vmem>>, %arg10: memref<8x128xf32, #tpu.memory_space<vmem>>, %arg11: memref<8x8xf32, #tpu.memory_space<vmem>>) attributes {dimension_semantics = [#tpu.dimension_semantics<parallel>], iteration_bounds = array<i64: 2>, scalar_prefetch = 0 : i64, scratch_operands = 0 : i64, tpu.core_type = #tpu.core_type<tc>, window_params = [{transform_indices = @transform_0, window_bounds = array<i64: 8, 128>}, {transform_indices = @transform_1, window_bounds = array<i64: 8, 8, 128>}, {transform_indices = @transform_2, window_bounds = array<i64: 8, 8>}, {transform_indices = @transform_3, window_bounds = array<i64: 8, 8>}, {transform_indices = @transform_4, window_bounds = array<i64: 8, 8>}, {pipeline_mode = #tpu.pipeline_mode<synchronous>, transform_indices = @transform_5, window_bounds = array<i64: 128, 128>}, {pipeline_mode = #tpu.pipeline_mode<synchronous>, transform_indices = @transform_6, window_bounds = array<i64: 3, 128>}, {pipeline_mode = #tpu.pipeline_mode<synchronous>, transform_indices = @transform_7, window_bounds = array<i64: 1, 128>}, {pipeline_mode = #tpu.pipeline_mode<synchronous>, transform_indices = @transform_8, window_bounds = array<i64: 1, 1>}, {transform_indices = @transform_9, window_bounds = array<i64: 8, 128>}, {transform_indices = @transform_10, window_bounds = array<i64: 8, 8>}]} {
    %c0 = arith.constant 0 : index
    %c0_0 = arith.constant 0 : index
    %c0_1 = arith.constant 0 : index
    %0 = vector.load %arg2[%c0, %c0_0, %c0_1] : memref<8x8x128xbf16, #tpu.memory_space<vmem>>, vector<8x8x128xbf16>
    %1 = vector.shape_cast %0 : vector<8x8x128xbf16> to vector<64x128xbf16>
    %c0_2 = arith.constant 0 : index
    %c0_3 = arith.constant 0 : index
    %2 = vector.load %arg6[%c0_2, %c0_3] : memref<128x128xbf16, #tpu.memory_space<vmem>>, vector<128x128xbf16>
    %cst = arith.constant dense<0.000000e+00> : vector<64x128xf32>
    %3 = tpu.matmul %1, %2, %cst {dimension_numbers = #tpu.dot_dimension_numbers<[1], [0], [0], [1], [0, 0, 1, 1], [], []>} : vector<64x128xbf16>, vector<128x128xbf16>, vector<64x128xf32> -> vector<64x128xf32>
    %4 = vector.shape_cast %3 : vector<64x128xf32> to vector<8x8x128xf32>
    %c0_4 = arith.constant 0 : index
    %c0_5 = arith.constant 0 : index
    %5 = vector.load %arg7[%c0_4, %c0_5] : memref<3x128xf32, #tpu.memory_space<vmem>>, vector<3x128xf32>
    %6 = vector.extract_strided_slice %5 {offsets = [0, 0], sizes = [1, 128], strides = [1, 1]} : vector<3x128xf32> to vector<1x128xf32>
    %7 = vector.shape_cast %6 : vector<1x128xf32> to vector<1x1x128xf32>
    %8 = vector.extract_strided_slice %5 {offsets = [1, 0], sizes = [1, 128], strides = [1, 1]} : vector<3x128xf32> to vector<1x128xf32>
    %9 = vector.shape_cast %8 : vector<1x128xf32> to vector<1x1x128xf32>
    %10 = vector.extract_strided_slice %5 {offsets = [2, 0], sizes = [1, 128], strides = [1, 1]} : vector<3x128xf32> to vector<1x128xf32>
    %11 = vector.shape_cast %10 : vector<1x128xf32> to vector<1x1x128xf32>
    %c0_6 = arith.constant 0 : index
    %c0_7 = arith.constant 0 : index
    %12 = vector.load %arg1[%c0_6, %c0_7] : memref<8x128xf32, #tpu.memory_space<vmem>>, vector<8x128xf32>
    %13 = vector.shape_cast %12 : vector<8x128xf32> to vector<8x1x128xf32>
    %c0_8 = arith.constant 0 : index
    %c0_9 = arith.constant 0 : index
    %14 = vector.load %arg3[%c0_8, %c0_9] : memref<8x8xf32, #tpu.memory_space<vmem>>, vector<8x8xf32>
    %15 = vector.shape_cast %14 : vector<8x8xf32> to vector<8x8x1xf32>
    %16 = vector.broadcast %15 : vector<8x8x1xf32> to vector<8x8x128xf32>
    %17 = vector.broadcast %7 : vector<1x1x128xf32> to vector<8x8x128xf32>
    %18 = arith.mulf %16, %17 : vector<8x8x128xf32>
    %c0_10 = arith.constant 0 : index
    %c0_11 = arith.constant 0 : index
    %19 = vector.load %arg4[%c0_10, %c0_11] : memref<8x8xf32, #tpu.memory_space<vmem>>, vector<8x8xf32>
    %20 = vector.shape_cast %19 : vector<8x8xf32> to vector<8x8x1xf32>
    %21 = vector.broadcast %20 : vector<8x8x1xf32> to vector<8x8x128xf32>
    %22 = vector.broadcast %9 : vector<1x1x128xf32> to vector<8x8x128xf32>
    %23 = arith.mulf %21, %22 : vector<8x8x128xf32>
    %c0_12 = arith.constant 0 : index
    %c0_13 = arith.constant 0 : index
    %24 = vector.load %arg5[%c0_12, %c0_13] : memref<8x8xf32, #tpu.memory_space<vmem>>, vector<8x8xf32>
    %25 = vector.shape_cast %24 : vector<8x8xf32> to vector<8x8x1xf32>
    %26 = vector.broadcast %25 : vector<8x8x1xf32> to vector<8x8x128xf32>
    %27 = vector.broadcast %11 : vector<1x1x128xf32> to vector<8x8x128xf32>
    %28 = arith.mulf %26, %27 : vector<8x8x128xf32>
    %29 = vector.broadcast %13 : vector<8x1x128xf32> to vector<8x8x128xf32>
    %30 = arith.addf %28, %29 : vector<8x8x128xf32>
    %31 = arith.addf %23, %30 : vector<8x8x128xf32>
    %32 = arith.addf %18, %31 : vector<8x8x128xf32>
    %33 = arith.addf %4, %32 : vector<8x8x128xf32>
    %34 = math.tanh %33 : vector<8x8x128xf32>
    %c0_14 = arith.constant 0 : index
    %c0_15 = arith.constant 0 : index
    %35 = vector.load %arg8[%c0_14, %c0_15] : memref<1x128xf32, #tpu.memory_space<vmem>>, vector<1x128xf32>
    %36 = vector.shape_cast %35 : vector<1x128xf32> to vector<1x1x128xf32>
    %37 = vector.broadcast %36 : vector<1x1x128xf32> to vector<8x8x128xf32>
    %38 = arith.mulf %34, %37 : vector<8x8x128xf32>
    %cst_16 = arith.constant dense<0.000000e+00> : vector<8x8xf32>
    %39 = vector.multi_reduction <add>, %38, %cst_16 [2] : vector<8x8x128xf32> to vector<8x8xf32>
    %c0_17 = arith.constant 0 : index
    %c0_18 = arith.constant 0 : index
    %40 = vector.load %arg9[%c0_17, %c0_18] : memref<1x1xf32, #tpu.memory_space<vmem>>, vector<1x1xf32>
    %41 = vector.broadcast %40 : vector<1x1xf32> to vector<8x8xf32>
    %42 = arith.addf %39, %41 : vector<8x8xf32>
    %cst_19 = arith.constant dense<0xFF800000> : vector<8xf32>
    %43 = vector.multi_reduction <maximumf>, %42, %cst_19 [1] : vector<8x8xf32> to vector<8xf32>
    %44 = vector.shape_cast %43 : vector<8xf32> to vector<8x1xf32>
    %45 = vector.broadcast %44 : vector<8x1xf32> to vector<8x8xf32>
    %46 = arith.subf %42, %45 : vector<8x8xf32>
    %47 = math.exp %46 : vector<8x8xf32>
    %cst_20 = arith.constant dense<0.000000e+00> : vector<8xf32>
    %48 = vector.multi_reduction <add>, %47, %cst_20 [1] : vector<8x8xf32> to vector<8xf32>
    %49 = vector.shape_cast %48 : vector<8xf32> to vector<8x1xf32>
    %50 = tpu.reciprocal %49 {approx = true} : vector<8x1xf32> -> vector<8x1xf32>
    %51 = vector.broadcast %50 : vector<8x1xf32> to vector<8x8xf32>
    %52 = arith.mulf %47, %51 : vector<8x8xf32>
    %c0_21 = arith.constant 0 : index
    %c0_22 = arith.constant 0 : index
    %53 = vector.load %arg11[%c0_21, %c0_22] : memref<8x8xf32, #tpu.memory_space<vmem>>, vector<8x8xf32>
    tpu.vector_store %arg11[%c0_21, %c0_22], %52 {strides = array<i32>} : memref<8x8xf32, #tpu.memory_space<vmem>>, vector<8x8xf32>,
    %54 = vector.shape_cast %52 : vector<8x8xf32> to vector<8x1x8xf32>
    %55 = arith.truncf %54 : vector<8x1x8xf32> to vector<8x1x8xbf16>
    "tpu.trace_start"() <{level = 10 : i32, message = "bql,bld->bqd"}> : () -> ()
    %cst_23 = arith.constant dense<0.000000e+00> : vector<8x1x128xf32>
    %56 = tpu.matmul %55, %0, %cst_23 {dimension_numbers = #tpu.dot_dimension_numbers<[2], [1], [1], [2], [0, 0, 0, 1, 1, 2], [0], [0]>} : vector<8x1x8xbf16>, vector<8x8x128xbf16>, vector<8x1x128xf32> -> vector<8x1x128xf32>
    "tpu.trace_stop"() : () -> ()
    %57 = vector.shape_cast %56 : vector<8x1x128xf32> to vector<8x128xf32>
    %c0_24 = arith.constant 0 : index
    %c0_25 = arith.constant 0 : index
    %58 = vector.load %arg10[%c0_24, %c0_25] : memref<8x128xf32, #tpu.memory_space<vmem>>, vector<8x128xf32>
    tpu.vector_store %arg10[%c0_24, %c0_25], %57 {strides = array<i32>} : memref<8x128xf32, #tpu.memory_space<vmem>>, vector<8x128xf32>,
    return
  }
  func.func @transform_0(%arg0: i32) -> (i32, i32) {
    %c0_i32 = arith.constant 0 : i32
    %c0_i32_0 = arith.constant 0 : i32
    return %arg0, %c0_i32 : i32, i32
  }
  func.func @transform_1(%arg0: i32) -> (i32, i32, i32) {
    %c0_i32 = arith.constant 0 : i32
    %c0_i32_0 = arith.constant 0 : i32
    %c0_i32_1 = arith.constant 0 : i32
    return %arg0, %c0_i32, %c0_i32_0 : i32, i32, i32
  }
  func.func @transform_2(%arg0: i32) -> (i32, i32) {
    %c0_i32 = arith.constant 0 : i32
    %c0_i32_0 = arith.constant 0 : i32
    return %arg0, %c0_i32 : i32, i32
  }
  func.func @transform_3(%arg0: i32) -> (i32, i32) {
    %c0_i32 = arith.constant 0 : i32
    %c0_i32_0 = arith.constant 0 : i32
    return %arg0, %c0_i32 : i32, i32
  }
  func.func @transform_4(%arg0: i32) -> (i32, i32) {
    %c0_i32 = arith.constant 0 : i32
    %c0_i32_0 = arith.constant 0 : i32
    return %arg0, %c0_i32 : i32, i32
  }
  func.func @transform_5(%arg0: i32) -> (i32, i32) {
    %c0_i32 = arith.constant 0 : i32
    %c0_i32_0 = arith.constant 0 : i32
    %c0_i32_1 = arith.constant 0 : i32
    return %c0_i32, %c0_i32_0 : i32, i32
  }
  func.func @transform_6(%arg0: i32) -> (i32, i32) {
    %c0_i32 = arith.constant 0 : i32
    %c0_i32_0 = arith.constant 0 : i32
    %c0_i32_1 = arith.constant 0 : i32
    return %c0_i32, %c0_i32_0 : i32, i32
  }
  func.func @transform_7(%arg0: i32) -> (i32, i32) {
    %c0_i32 = arith.constant 0 : i32
    %c0_i32_0 = arith.constant 0 : i32
    %c0_i32_1 = arith.constant 0 : i32
    return %c0_i32, %c0_i32_0 : i32, i32
  }
  func.func @transform_8(%arg0: i32) -> (i32, i32) {
    %c0_i32 = arith.constant 0 : i32
    %c0_i32_0 = arith.constant 0 : i32
    %c0_i32_1 = arith.constant 0 : i32
    return %c0_i32, %c0_i32_0 : i32, i32
  }
  func.func @transform_9(%arg0: i32) -> (i32, i32) {
    %c0_i32 = arith.constant 0 : i32
    %c0_i32_0 = arith.constant 0 : i32
    return %arg0, %c0_i32 : i32, i32
  }
  func.func @transform_10(%arg0: i32) -> (i32, i32) {
    %c0_i32 = arith.constant 0 : i32
    %c0_i32_0 = arith.constant 0 : i32
    return %arg0, %c0_i32 : i32, i32
  }
}

</mosaic_0001>

<bundles_post_ra>
// kernel: tpu_custom_call.1
= control target key start
LH: loop header
LB: loop body
LE: loop exit
PB: predicated region body
PF: predicated region fallthrough
CT: control target
= control target key end

     0   :  { %s2945_s0 = inlined_call_operand.hbm [shape: f32[16,128], index: 0, kind: input, shape index: {}]   ;;  %s2946_s1 = inlined_call_operand.vmem [shape: bf16[16,8,128], index: 1, kind: input, shape index: {}]   ;;  %s2947_s2 = inlined_call_operand.vmem [shape: f32[16,8], index: 2, kind: input, shape index: {}]   ;;  %s2948_s3 = inlined_call_operand.vmem [shape: f32[16,8], index: 3, kind: input, shape index: {}]   ;;  %s2949_s4 = inlined_call_operand.vmem [shape: f32[16,8], index: 4, kind: input, shape index: {}]   ;;  %s2950_s5 = inlined_call_operand.hbm [shape: bf16[128,128], index: 5, kind: input, shape index: {}]   ;;  %s2951_s6 = inlined_call_operand.vmem [shape: f32[3,128], index: 6, kind: input, shape index: {}]   ;;  %s2952_s7 = inlined_call_operand.vmem [shape: f32[1,128], index: 7, kind: input, shape index: {}]   ;;  %s2953_s8 = inlined_call_operand.<no memory space> [shape: f32[1,1], index: 8, kind: input, shape index: {}]   ;;  %s2954_s9 = inlined_call_operand.hbm [shape: f32[16,128], index: 9, kind: output, shape index: {0}]   ;;  %s2955_s10 = inlined_call_operand.vmem [shape: f32[16,8], index: 10, kind: output, shape index: {1}]  }
   0x1   :  { %v16_v0 = vstv %s2953_s8 }
   0x2   :  { %17 = vst [vmem:[#allocation2] sm:$0x1] %v16_v0 }
   0x3   :  { %18 = vsyncpa [#allocation4], 0 }
   0x4   :  { %20 = vsyncpa [#allocation4 + $0x1], 0 }
   0x5   :  { %21 = vsyncpa [#allocation7], 0 }
   0x6   :  { %22 = vsyncpa [#allocation5], 0 }
   0x7   :  { %24 = vsyncpa [#allocation5 + $0x1], 0  ;;  %s2455_s15 = smov 0   ;;  %s2457_s16 = smov 0  }
   0x8   :  { %s2459_s17 = smov 0   ;;  %s2461_s18 = smov 0  }
   0x9 LB: > { %s2476_s8 = sadd.s32 4294967295, %s2386_s18   ;;  %s2004_s19 = sadd.s32 4294967294, %s2386_s18   ;;  %s2386_s18 = sphi %s2461_s18, %s2978_s18   ;;  %s2382_s17 = sphi %s2459_s17, %s2981_s17   ;;  %s2378_s16 = sphi %s2457_s16, %s2980_s16   ;;  %s2374_s15 = sphi %s2455_s15, %s2979_s15  }
   0xa   : > { %p50_p0 = scmp.ne.s32.totalorder %s2378_s16, %s2374_s15  ;;  %p2956_p1 = scmp.eq.s32.totalorder %s2476_s8, 0 }
   0xb   : > { %p268_p3 = scmp.eq.s32.totalorder %s2004_s19, 1  ;;  %p2005_p5 = scmp.ge.s32.totalorder %s2386_s18, 1 }
   0xc   : > { %p2485_p4 = por %p2956_p1, %p50_p0  ;;  %p301_p7 = scmp.lt.s32.totalorder %s2386_s18, 3 }
   0xd   : > { %p2490_p6 = por %p268_p3, %p50_p0  ;;  %s2388_s23 = smov [#allocation6]  }
   0xe   : > { %s2962_s20 = scalar_select %p2485_p4, 1, 0 }
   0xf   : > { %s2963_s21 = scalar_select %p2490_p6, 1, 0 }
  0x10   : > { %p2495_p8 = pnand %p2005_p5, %p301_p7  ;;  %s313_s24 = sshll.u32 %s2388_s23, 4  ;;  %s2499_s24 = int_to_ptr.vmem [resolvable:$true] %s313_s24 }
  0x11   : > { %2964 = sst [smem:[#allocation12_spill]] %s2963_s21  ;;  %s2511_s26 = sadd.s32 1, %s2386_s18  }
  0x12   : > { %s2965_s22 = scalar_select %p2495_p8, 1, 0 }
  0x13   : > { %p2154_p9 = pneg %p2495_p8  ;;  %2967 = sst [smem:[#allocation13_spill]] %s2511_s26 }
  0x14   : > { %s37_s27 = sadd.s32 1, %s2382_s17  ;;  %s34_s28 = ssub.s32 %s2386_s18, %s2511_s26 }
  0x15   : > { %p2506_p11 = pnand %p2154_p9, %p2956_p1  ;;  %s2258_s11 = scalar_lea.hbm %s2950_s5, 1024 }
  0x16   : > { %p2259_p12 = scmp.ne.s32.totalorder %s2950_s5, %s2258_s11  ;;  %p2265_p5 = scmp.lt.u32.totalorder %s2258_s11, %s2950_s5 }
  0x17   : > { %p2260_p13 = pneg %p2506_p11 }
  0x19   : > { %p2261_p0 = pnand %p2260_p13, %p2259_p12 }
  0x1b   : > { %p2262_p3 = pneg %p2261_p0 }
  0x1d   : > { %p2267_p7 = pnand %p2265_p5, %p2262_p3 }
  0x1f   : > { %2270 = shalt.err (!%p2267_p7)
}
  0x20   : > { %s2271_s23 = scalar_lea.vmem %s2499_s24, 1024  ;;  %p2279_p2 = scmp.lt.s32.totalorder %s2499_s24, %s2499_s24 }
  0x21   : > { %p2272_p9 = scmp.ne.s32.totalorder %s2499_s24, %s2271_s23  ;;  %p2280_p6 = scmp.lt.s32.totalorder %s2271_s23, %s2271_s23 }
  0x23   : > { %p2274_p10 = pnand %p2272_p9, %p2260_p13  ;;  %p2281_p4 = por %p2280_p6, %p2279_p2 }
  0x25   : > { %p2275_p1 = pneg %p2274_p10 }
  0x27   : > { %p2282_p8 = pnand %p2281_p4, %p2275_p1 }
  0x29   : > { %2285 = shalt.err (!%p2282_p8)
}
  0x2a   : > { %s2389_s29 = smov 64   ;;  %s2390_s30 = smov 4  }
  0x2b   : > { %2157 = dma.hbm_to_vmem [thread:$0]  (!%p2506_p11), %s2950_s5, 1024, %s2499_s24, [#allocation7], %s2389_s29, %s2389_s29, %s2390_s30  }
  0x2c   : > { %p35_p2 = scmp.eq.s32.totalorder %s34_s28, 0  ;;  %p44_p1 = scmp.ne.s32.totalorder %s2382_s17, %s2378_s16 }
  0x2d   : > { %p45_p4 = scmp.eq.s32.totalorder %s2386_s18, 0  ;;  %p2167_p6 = scmp.lt.s32.totalorder %s2386_s18, 2 }
  0x2e   : > { %s2542_s13 = scalar_select %p35_p2, %s2382_s17, %s37_s27  }
  0x2f   : > { %p46_p8 = por %p45_p4, %p44_p1  ;;  %p2968_p10 = scmp.eq.s32.totalorder %s2476_s8, 1 }
  0x30   : > { %s336_s19 = sand.u32 1, %s2382_s17   ;;  %s2009_s23 = sshll.u32 %s2386_s18, 7 }
  0x31   : > { %p2546_p12 = por %p2968_p10, %p44_p1  ;;  %s2008_s26 = sshll.u32 %s336_s19, 3 }
  0x32   : > { %s2555_s11 = scalar_lea.hbm %s2945_s0, %s2009_s23  ;;  %s340_s24 = scalar_lea.vmem [#allocation3], %s2008_s26 }
  0x33   : > { %s347_s27 = sshll.u32 %s340_s24, 4  ;;  %p2557_p11 = pnand %p2167_p6, %p46_p8  ;;  %s2561_s27 = int_to_ptr.vmem [resolvable:$true] %s347_s27 }
  0x34   : > { %s337_s29 = scalar_lea.sflag [#allocation4], %s336_s19  ;;  %s2286_s30 = scalar_lea.hbm %s2555_s11, 128 }
  0x35   : > { %p2287_p13 = scmp.ne.s32.totalorder %s2555_s11, %s2286_s30  ;;  %p2288_p0 = pneg %p2557_p11 }
  0x36   : > { %s2291_s12 = scalar_lea.hbm %s2945_s0, 256  ;;  %p2292_p7 = scmp.lt.u32.totalorder %s2555_s11, %s2945_s0 }
  0x37   : > { %p2289_p3 = pnand %p2288_p0, %p2287_p13  ;;  %p2293_p9 = scmp.lt.u32.totalorder %s2291_s12, %s2286_s30 }
  0x38   : > { %p2295_p1 = scmp.lt.u32.totalorder %s2286_s30, %s2555_s11 }
  0x39   : > { %p2290_p5 = pneg %p2289_p3  ;;  %p2294_p2 = por %p2293_p9, %p2292_p7 }
  0x3b   : > { %p2296_p4 = por %p2295_p1, %p2294_p2 }
  0x3d   : > { %p2297_p6 = pnand %p2296_p4, %p2290_p5 }
  0x3f   : > { %2300 = shalt.err (!%p2297_p6)
}
  0x40   : > { %s2301_s19 = scalar_lea.vmem %s2561_s27, 128  ;;  %s2391_s24 = smov [#allocation3]  }
  0x41   : > { %p2302_p8 = scmp.ne.s32.totalorder %s2561_s27, %s2301_s19  ;;  %s2306_s21 = sshll.u32 %s2391_s24, 4  ;;  %s2307_s21 = int_to_ptr.vmem [resolvable:$false] %s2306_s21 }
  0x42   : > { %s2308_s26 = scalar_lea.vmem %s2307_s21, 256  ;;  %p2309_p3 = scmp.lt.s32.totalorder %s2561_s27, %s2307_s21 }
  0x43   : > { %p2304_p10 = pnand %p2302_p8, %p2288_p0  ;;  %p2310_p7 = scmp.lt.s32.totalorder %s2308_s26, %s2301_s19 }
  0x45   : > { %p2305_p13 = pneg %p2304_p10  ;;  %p2311_p9 = por %p2310_p7, %p2309_p3 }
  0x47   : > { %p2312_p2 = pnand %p2311_p9, %p2305_p13 }
  0x49   : > { %2315 = shalt.err (!%p2312_p2)
}
  0x4a   : > { %2161 = dma.hbm_to_vmem [thread:$0]  (!%p2557_p11), %s2555_s11, 128, %s2561_s27, %s337_s29  }
  0x4b   : > { %p2971_p5 = scmp.ne.s32.totalorder %s2965_s22, 0 }
  0x4c   : > { %s2591_s30 = sand.u32 (!%p2971_p5), 1, %s2378_s16   ;;  %p2972_p0 = scmp.ne.s32.totalorder (!%p2971_p5), %s2962_s20, 0 }
  0x4d   : > { %386 = sbr.rel (%p2971_p5) target bundleno = 1404 (0x57c), region = 56  ;;  %s2011_s12 = sshll.u32 (!%p2971_p5), %s2591_s30, 3 }
  0x4e   : > { %s389_s23 = scalar_lea.sflag (!%p2971_p5), [#allocation4], %s2591_s30  ;;  %s2597_s25 = scalar_lea.vmem (!%p2971_p5), [#allocation3], %s2011_s12 }
  0x54   : > { %2361 = dma.done.wait (%p2972_p0), %s389_s23, 128  }
  0x55   : > { %2363 = vsyncadd (%p2972_p0), %s389_s23, 4294967168  ;;  %p2973_p11 = scmp.eq.s32.totalorder %s2476_s8, 0 }
  0x57   : > { %2365 = dma.done.wait (%p2973_p11), [#allocation7], 1024   ;;  %p2974_p1 = pmov %p2973_p11 }
  0x58   : > { %s2014_s22 = sshll.u32 %s2476_s8, 3  ;;  %v645_v1 = vlaneseq  ;;  %p460_p6 = scmp.lt.s32.totalorder %s2476_s8, 1  ;;  %v2211_v5 = vld [vmem:[#allocation6] sm:$0xff]   ;;  %v2212_v6 = vld [vmem:[#allocation6 + $0x8] sm:$0xff]   ;;  %v2213_v7 = vld [vmem:[#allocation6 + $0x10] sm:$0xff]   ;;  %v2392_v60 = vmov 0  }
  0x59   : > { %2367 = vsyncadd (%p2974_p1), [#allocation7], 4294966272  ;;  %p455_p4 = scmp.lt.s32.totalorder %s2014_s22, 15  ;;  %2074 = vmatprep.subr.bf16.mxu0 %v2211_v5  ;;  %v2214_v10 = vld [vmem:[#allocation6 + $0x18] sm:$0xff]   ;;  %v2215_v19 = vld [vmem:[#allocation6 + $0x20] sm:$0xff]   ;;  %2209 = vset.pattern.permute.xlu1 %v2392_v60  ;;  %vm1068_vm0 = vcmask 1041409  }
  0x5a   : > { %v2609_v2 = vshrl.u32 %v645_v1, 7  ;;  %v1035_v3 = vand.u32 127, %v645_v1  ;;  %s461_s20 = scalar_select %p460_p6, %s2476_s8, 1  ;;  %2075 = vmatpush3.bf16.msra.mxu0 %v2211_v5  ;;  %v2216_v23 = vld [vmem:[#allocation6 + $0x28] sm:$0xff]   ;;  %v2217_v27 = vld [vmem:[#allocation6 + $0x30] sm:$0xff]   ;;  %v2218_v31 = vld [vmem:[#allocation6 + $0x38] sm:$0xff]   ;;  %2210 = vset.pattern.permute.xlu0 %v2392_v60 }
  0x5b   : > { %s2983_s22 = smov (!%p455_p4, %s2014_s22), 15  ;;  %2076 = vmatprep.subr.bf16.mxu0 %v2212_v6  ;;  %vm1070_vm1 = vcmask 1042434   ;;  %vm1072_vm2 = vcmask 1043459   ;;  %vm1074_vm3 = vcmask 1044484   ;;  %vm1076_vm4 = vcmask 1045509   ;;  %s2396_s24 = smov [#allocation8]  }
  0x5c   : > { %v2612_v4 = vsub.s32 %v1035_v3, %v2609_v2  ;;  %s2015_s11 = sshll.u32 %s2983_s22, 2  ;;  %s2615_s27 = sshll.u32 %s461_s20, 3  ;;  %v2627_v8 = vsub.s32 0, %v2609_v2  ;;  %v2630_v9 = vsub.s32 2, %v2609_v2  ;;  %v2639_v13 = vsub.s32 1, %v2609_v2 }
  0x5d   : > { %s2620_s19 = scalar_lea.vmem %s2946_s1, %s2015_s11  ;;  %s471_s26 = scalar_lea.vmem %s2949_s4, %s2615_s27  ;;  %v2660_v22 = vsub.s32 3, %v2609_v2  ;;  %v2667_v26 = vsub.s32 4, %v2609_v2  ;;  %v2680_v34 = vsub.s32 5, %v2609_v2  ;;  %v2704_v44 = vsub.s32 6, %v2609_v2 }
  0x5e   : > { %2077 = vmatpush3.bf16.msra.mxu0 %v2212_v6  ;;  %v2633_v11 = vld [vmem:[%s2620_s19] sm:$0xf]  ;;  %v2636_v12 = vld [vmem:[%s2620_s19 + $0x4] sm:$0xf]  ;;  %s467_s20 = scalar_lea.vmem %s2948_s3, %s2615_s27  ;;  %s463_s29 = scalar_lea.vmem %s2947_s2, %s2615_s27  ;;  %v2683_v35 = vld [vmem:[%s2620_s19 + $0x8] sm:$0xf] }
  0x5f   : > { %2078 = vmatprep.subr.bf16.mxu0 %v2213_v7  ;;  %v2020_v14 = vcombine.low %v2633_v11, %v2636_v12  ;;  %v2647_v15 = vld [vmem:[%s471_s26] sm:$0xff]  ;;  %v2686_v36 = vld [vmem:[%s2620_s19 + $0xc] sm:$0xf]  ;;  %v2689_v37 = vld [vmem:[%s2620_s19 + $0x10] sm:$0xf]  ;;  %v2718_v50 = vsub.s32 7, %v2609_v2  ;;  %s475_s22 = scalar_lea.vmem %s2955_s10, %s2615_s27 }
  0x60   : > { %v832_v16 = vrot.slane %v2647_v15, %v2627_v8  ;;  %v846_v17 = vrot.slane %v2647_v15, %v2630_v9  ;;  %v2653_v18 = vld [vmem:[%s467_s20] sm:$0xff]  ;;  %v839_v20 = vrot.slane %v2647_v15, %v2639_v13  ;;  %v853_v25 = vrot.slane %v2647_v15, %v2660_v22  ;;  %v2692_v38 = vld [vmem:[%s2620_s19 + $0x14] sm:$0xf]  ;;  %v2709_v46 = vld [vmem:[%s2620_s19 + $0x18] sm:$0xf]  ;;  %s2043_s27 = sshll.u32 %s2476_s8, 7 }
  0x61   : > { %2090 = vmatprep.mubr.bf16.mxu0 %v2020_v14  ;;  %v763_v21 = vrot.slane %v2653_v18, %v2627_v8  ;;  %v770_v24 = vrot.slane %v2653_v18, %v2639_v13  ;;  %v777_v28 = vrot.slane %v2653_v18, %v2630_v9  ;;  %v860_v29 = vrot.slane %v2647_v15, %v2667_v26  ;;  %v690_v30 = vld [vmem:[%s463_s29] sm:$0xff]  ;;  %v2712_v47 = vld [vmem:[%s2620_s19 + $0x1c] sm:$0xf]  ;;  %s447_s20 = scalar_lea.vmem [#allocation8], %s2011_s12  ;;  %s2900_s19 = scalar_lea.hbm %s2954_s9, %s2043_s27 }
  0x62   : > { %2079 = vmatpush3.bf16.msra.mxu0 %v2213_v7  ;;  %834 = vbcast.lane.b32.xlu0 %v832_v16, 256  ;;  %v694_v32 = vrot.slane %v690_v30, %v2627_v8  ;;  %v701_v33 = vrot.slane %v690_v30, %v2639_v13  ;;  %v784_v39 = vrot.slane %v2653_v18, %v2660_v22  ;;  %v2393_v14 = vmov 1966171168   ;;  %s1849_s11 = sshll.u32 %s447_s20, 4  ;;  %s1832_s8 = scalar_lea.sflag [#allocation5], %s2591_s30  ;;  %s2902_s11 = int_to_ptr.vmem [resolvable:$true] %s1849_s11 }
  0x63   : > { %2080 = vmatprep.subr.bf16.mxu0 %v2214_v10  ;;  %848 = vbcast.lane.b32.xlu1 %v846_v17, 256  ;;  %v867_v40 = vrot.slane %v2647_v15, %v2680_v34  ;;  %v2021_v41 = vcombine.low %v2683_v35, %v2686_v36  ;;  %v2022_v42 = vcombine.low %v2689_v37, %v2692_v38  ;;  %vm1078_vm5 = vcmask 1046534   ;;  %s2316_s12 = scalar_lea.vmem %s2902_s11, 128 }
  0x64   : > { %v708_v43 = vrot.slane %v690_v30, %v2630_v9  ;;  %v791_v45 = vrot.slane %v2653_v18, %v2667_v26  ;;  %v874_v48 = vrot.slane %v2647_v15, %v2704_v44  ;;  %v715_v49 = vrot.slane %v690_v30, %v2660_v22  ;;  %p2317_p8 = scmp.ne.s32.totalorder %s2902_s11, %s2316_s12 }
  0x65   : > { %v2023_v51 = vcombine.low %v2709_v46, %v2712_v47  ;;  %v798_v52 = vrot.slane %v2653_v18, %v2680_v34  ;;  %v881_v53 = vrot.slane %v2647_v15, %v2718_v50  ;;  %v722_v54 = vrot.slane %v690_v30, %v2667_v26 }
  0x66   : > { %2081 = vmatpush3.bf16.msra.mxu0 %v2214_v10  ;;  %841 = vbcast.lane.b32.xlu0 %v839_v20, 256  ;;  %v805_v55 = vrot.slane %v2653_v18, %v2704_v44  ;;  %v729_v56 = vrot.slane %v690_v30, %v2680_v34  ;;  %v812_v57 = vrot.slane %v2653_v18, %v2718_v50  ;;  %v643_v15 = vunpack.c.l.s4 %v2393_v14  ;;  %p2318_p10 = pnand %p2317_p8, %p2546_p12 }
  0x67   : > { %2082 = vmatprep.subr.bf16.mxu0 %v2215_v19  ;;  %765 = vbcast.lane.b32.xlu1 %v763_v21, 256  ;;  %v736_v58 = vrot.slane %v690_v30, %v2704_v44  ;;  %v743_v59 = vrot.slane %v690_v30, %v2718_v50  ;;  %v639_v21 = vld [vmem:[%s2597_s25] sm:$0xff]  ;;  %vm1080_vm6 = vcmask 1047559   ;;  %vm1083_vm7 = vcmask 64512   ;;  %s2320_s25 = sshll.u32 %s2396_s24, 4  ;;  %s2321_s25 = int_to_ptr.vmem [resolvable:$false] %s2320_s25 }
  0x68   : > { %v644_v17 = vunpack.c.0.s8 %v643_v15  ;;  %v641_v30 = vcombine.high %v639_v21, %v639_v21  ;;  %vm1371_vm8 = vcmask 1043456   ;;  %vm2395_vm9 = vmmov 0   ;;  %p2319_p13 = pneg %p2318_p10  ;;  %s2322_s21 = scalar_lea.vmem %s2321_s25, 256 }
  0x69   : > { %p2323_p3 = scmp.lt.s32.totalorder %s2902_s11, %s2321_s25  ;;  %p2324_p7 = scmp.lt.s32.totalorder %s2322_s21, %s2316_s12 }
  0x6a   : > { %2083 = vmatpush3.bf16.msra.mxu0 %v2215_v19  ;;  %772 = vbcast.lane.b32.xlu0 %v770_v24, 256  ;;  %v647_v20 = vsub.s32 %v644_v17, %v2609_v2 }
  0x6b   : > { %2084 = vmatprep.subr.bf16.mxu0 %v2216_v23  ;;  %855 = vbcast.lane.b32.xlu1 %v853_v25, 256  ;;  %p2325_p9 = por %p2324_p7, %p2323_p3 }
  0x6c   : > { %v648_v24 = vrot.slane %v639_v21, %v647_v20 }
  0x6d   : > { %p2326_p2 = pnand %p2325_p9, %p2319_p13 }
  0x6e   : > { %2085 = vmatpush3.bf16.msra.mxu0 %v2216_v23  ;;  %779 = vbcast.lane.b32.xlu0 %v777_v28, 256  ;;  %v638_v28 = vld [vmem:[%s2951_s6] sm:$0x7] }
  0x6f   : > { %2086 = vmatprep.subr.bf16.mxu0 %v2217_v27  ;;  %862 = vbcast.lane.b32.xlu1 %v860_v29, 256  ;;  %v664_v29 = vrot.slane %v648_v24, %v647_v20 }
  0x72   : > { %2087 = vmatpush3.bf16.msra.mxu0 %v2217_v27  ;;  %696 = vbcast.lane.b32.xlu0 %v694_v32, 256  ;;  %v656_v27 = vcombine.high %v648_v24, %v648_v24  ;;  %v686_v32 = vcombine.high %v664_v29, %v664_v29 }
  0x73   : > { %2088 = vmatprep.subr.bf16.mxu0 %v2218_v31  ;;  %703 = vbcast.lane.b32.xlu1 %v701_v33, 256 }
  0x74   : > { %v678_v33 = vrot.slane %v656_v27, %v647_v20 }
  0x76   : > { %2089 = vmatpush3.bf16.msra.mxu0 %v2218_v31  ;;  %786 = vbcast.lane.b32.xlu0 %v784_v39, 256  ;;  %v888_v39 = vrot.slane %v638_v28, %v2630_v9 }
  0x77   : > { %869 = vbcast.lane.b32.xlu1 %v867_v40, 256 }
  0x79   : > { %2091 = vmatmul.mubr.bf16.vlgmr.msra.gmra.mrb[0].mxu0 %v2021_v41  ;;  %v688_v41 = vcombine.high %v678_v33, %v678_v33 }
  0x7a   : > { %2094 = vmatprep.mubr.bf16.mxu0 %v2022_v42  ;;  %710 = vbcast.lane.b32.xlu0 %v708_v43, 256  ;;  %v655_v42 = vrot.slane %v641_v30, %v647_v20 }
  0x7b   : > { %793 = vbcast.lane.b32.xlu1 %v791_v45, 256  ;;  %v908_v45 = vrot.slane %v686_v32, %v2627_v8 }
  0x7e   : > { %876 = vbcast.lane.b32.xlu0 %v874_v48, 256  ;;  %v657_v48 = vcombine.high %v655_v42, %v655_v42 }
  0x7f   : > { %717 = vbcast.lane.b32.xlu1 %v715_v49, 256 }
  0x80   : > { %v685_v14 = vrot.slane %v657_v48, %v647_v20 }
  0x81   : > { %2095 = vmatmul.mubr.bf16.gmra.mrb[4].mxu0 %v2023_v51  ;;  %v900_v51 = vrot.slane %v664_v29, %v2627_v8 }
  0x82   : > { %800 = vbcast.lane.b32.xlu0 %v798_v52, 256  ;;  %v819_v52 = vrot.slane %v638_v28, %v2639_v13  ;;  %v689_v29 = vcombine.high %v685_v14, %v685_v14 }
  0x83   : > { %883 = vbcast.lane.b32.xlu1 %v881_v53, 256 }
  0x86   : > { %724 = vbcast.lane.b32.xlu0 %v722_v54, 256  ;;  %v912_v54 = vrot.slane %v688_v41, %v2627_v8 }
  0x87   : > { %807 = vbcast.lane.b32.xlu1 %v805_v55, 256  ;;  %v671_v55 = vrot.slane %v655_v42, %v647_v20 }
  0x89   : > { %v916_v20 = vrot.slane %v671_v55, %v2627_v8 }
  0x8a   : > { %731 = vbcast.lane.b32.xlu0 %v729_v56, 256 }
  0x8b   : > { %814 = vbcast.lane.b32.xlu1 %v812_v57, 256  ;;  %v904_v57 = vrot.slane %v678_v33, %v2627_v8 }
  0x8e   : > { %738 = vbcast.lane.b32.xlu0 %v736_v58, 256 }
  0x8f   : > { %745 = vbcast.lane.b32.xlu1 %v743_v59, 256 }
  0xd4   : > { %v835_v61 = vpop.permute.xlu0 %834 }
  0xd5   : > { %v849_v62 = vpop.permute.xlu1 %848  ;;  %v889_v49 = vmul.f32 %v888_v39, %v835_v61  ;;  %v750_v61 = vrot.slane %v638_v28, %v2627_v8 }
  0xd6   : > { %v891_v43 = vmul.f32 %v888_v39, %v849_v62  ;;  %v687_v62 = vcombine.high %v671_v55, %v671_v55 }
  0xd7   : > { %v937_v15 = vadd.f32 %v900_v51, %v889_v49 }
  0xd8   : > { %v842_v63 = vpop.permute.xlu0 %841  ;;  %v939_v59 = vadd.f32 %v908_v45, %v891_v43  ;;  %v924_v33 = vrot.slane %v687_v62, %v2627_v8 }
  0xd9   : > { %v766_v0 = vpop.permute.xlu1 %765  ;;  %v890_v56 = vmul.f32 %v888_v39, %v842_v63 }
  0xda   : > { %v820_v17 = vmul.f32 %v819_v52, %v766_v0 }
  0xdc   : > { %v773_v1 = vpop.permute.xlu0 %772  ;;  %v945_v43 = vadd.f32 %v937_v15, %v820_v17 }
  0xdd   : > { %v856_v3 = vpop.permute.xlu1 %855  ;;  %v821_v30 = vmul.f32 %v819_v52, %v773_v1 }
  0xde   : > { %v892_v53 = vmul.f32 %v888_v39, %v856_v3  ;;  %v938_v3 = vadd.f32 %v904_v57, %v890_v56 }
  0xe0   : > { %v780_v5 = vpop.permute.xlu0 %779  ;;  %v940_v24 = vadd.f32 %v912_v54, %v892_v53  ;;  %v946_v51 = vadd.f32 %v938_v3, %v821_v30 }
  0xe1   : > { %v863_v6 = vpop.permute.xlu1 %862  ;;  %v822_v60 = vmul.f32 %v819_v52, %v780_v5 }
  0xe2   : > { %v893_v5 = vmul.f32 %v888_v39, %v863_v6 }
  0xe3   : > { %v947_v41 = vadd.f32 %v939_v59, %v822_v60 }
  0xe4   : > { %v697_v7 = vpop.permute.xlu0 %696  ;;  %v941_v57 = vadd.f32 %v916_v20, %v893_v5 }
  0xe5   : > { %v2734_v10 = vpop.permute.xlu1 %703  ;;  %v751_v45 = vmul.f32 %v750_v61, %v697_v7 }
  0xe6   : > { %v752_v1 = vmul.f32 %v750_v61, %v2734_v10 }
  0xe7   : > { %v953_v7 = vadd.f32 %v945_v43, %v751_v45 }
  0xe8   : > { %v787_v16 = vpop.permute.xlu0 %786 }
  0xe9   : > { %v870_v18 = vpop.permute.xlu1 %869  ;;  %v823_v27 = vmul.f32 %v819_v52, %v787_v16  ;;  %v928_v16 = vrot.slane %v689_v29, %v2627_v8 }
  0xea   : > { %v894_v53 = vmul.f32 %v888_v39, %v870_v18 }
  0xeb   : > { %v948_v48 = vadd.f32 %v940_v24, %v823_v27 }
  0xec   : > { %v711_v19 = vpop.permute.xlu0 %710 }
  0xed   : > { %v794_v23 = vpop.permute.xlu1 %793  ;;  %v753_v63 = vmul.f32 %v750_v61, %v711_v19  ;;  %v920_v19 = vrot.slane %v685_v14, %v2627_v8 }
  0xee   : > { %v824_v6 = vmul.f32 %v819_v52, %v794_v23 }
  0xef   : > { %v955_v56 = vadd.f32 %v947_v41, %v753_v63  ;;  %v942_v17 = vadd.f32 %v920_v19, %v894_v53 }
  0xf0   : > { %v877_v25 = vpop.permute.xlu0 %876  ;;  %v949_v23 = vadd.f32 %v941_v57, %v824_v6 }
  0xf1   : > { %v718_v31 = vpop.permute.xlu1 %717  ;;  %v895_v42 = vmul.f32 %v888_v39, %v877_v25 }
  0xf2   : > { %v754_v28 = vmul.f32 %v750_v61, %v718_v31 }
  0xf3   : > { %v943_v25 = vadd.f32 %v924_v33, %v895_v42 }
  0xf4   : > { %v801_v40 = vpop.permute.xlu0 %800  ;;  %v956_v15 = vadd.f32 %v948_v48, %v754_v28 }
  0xf5   : > { %v884_v2 = vpop.permute.xlu1 %883  ;;  %v825_v24 = vmul.f32 %v819_v52, %v801_v40 }
  0xf6   : > { %v896_v49 = vmul.f32 %v888_v39, %v884_v2  ;;  %v954_v39 = vadd.f32 %v946_v51, %v752_v1  ;;  %v2032_v51 = vld [vmem:[%s2952_s7] ss:$0 sm:$0xff] }
  0xf7   : > { %v950_v33 = vadd.f32 %v942_v17, %v825_v24 }
  0xf8   : > { %v725_v58 = vpop.permute.xlu0 %724  ;;  %v944_v60 = vadd.f32 %v928_v16, %v896_v49 }
  0xf9   : > { %v808_v21 = vpop.permute.xlu1 %807  ;;  %v755_v30 = vmul.f32 %v750_v61, %v725_v58 }
  0xfa   : > { %v826_v54 = vmul.f32 %v819_v52, %v808_v21 }
  0xfc   : > { %v732_v32 = vpop.permute.xlu0 %731  ;;  %v951_v14 = vadd.f32 %v943_v25, %v826_v54 }
  0xfd   : > { %v815_v0 = vpop.permute.xlu1 %814  ;;  %v756_v43 = vmul.f32 %v750_v61, %v732_v32 }
  0xfe   : > { %v827_v62 = vmul.f32 %v819_v52, %v815_v0  ;;  %v957_v52 = vadd.f32 %v949_v23, %v755_v30 }
  0xff   : > { %v958_v49 = vadd.f32 %v950_v33, %v756_v43 }
 0x100   : > { %v739_v59 = vpop.permute.xlu0 %738  ;;  %v952_v63 = vadd.f32 %v944_v60, %v827_v62 }
 0x101   : > { %v746_v10 = vpop.permute.xlu1 %745  ;;  %v757_v29 = vmul.f32 %v750_v61, %v739_v59 }
 0x102   : > { %v758_v42 = vmul.f32 %v750_v61, %v746_v10 }
 0x103   : > { %v959_v5 = vadd.f32 %v951_v14, %v757_v29 }
 0x104   : > { %v960_v0 = vadd.f32 %v952_v63, %v758_v42 }
 0x14c   : > { %v2092_v55 = vpop.f32.mrb[0].mxu0 }
 0x14d   : > { %v963_v31 = vadd.f32 %v2092_v55, %v955_v56  ;;  %v607_v2 = vpop.f32.mrb[1].mxu0 }
 0x14e   : > { %v961_v27 = vadd.f32 %v953_v7, %v607_v2  ;;  %v2093_v18 = vpop.f32.mrb[2].mxu0 }
 0x14f   : > { %2224 = vtanh.f32 %v963_v31  ;;  %v964_v21 = vadd.f32 %v2093_v18, %v956_v15  ;;  %v610_v3 = vpop.f32.mrb[3].mxu0  ;;  %v2033_v15 = vld [vmem:[#allocation2] ss:$0 sm:$0xff] }
 0x150   : > { %v962_v41 = vadd.f32 %v954_v39, %v610_v3  ;;  %2226 = vtanh.f32 %v961_v27 }
 0x152   : > { %2228 = vtanh.f32 %v962_v41 }
 0x153   : > { %2230 = vtanh.f32 %v964_v21 }
 0x154   : > { %v2096_v40 = vpop.f32.mrb[4].mxu0 }
 0x155   : > { %v967_v20 = vadd.f32 %v2096_v40, %v959_v5  ;;  %v623_v45 = vpop.f32.mrb[5].mxu0 }
 0x156   : > { %v965_v48 = vadd.f32 %v957_v52, %v623_v45  ;;  %v2097_v28 = vpop.f32.mrb[6].mxu0 }
 0x157   : > { %2232 = vtanh.f32 %v967_v20  ;;  %v968_v16 = vadd.f32 %v2097_v28, %v960_v0  ;;  %v626_v58 = vpop.f32.mrb[7].mxu0 }
 0x158   : > { %v966_v1 = vadd.f32 %v958_v49, %v626_v58  ;;  %2234 = vtanh.f32 %v965_v48 }
 0x159   : > { %v2225_v61 = vpop.eup %2224 }
 0x15a   : > { %2236 = vtanh.f32 %v966_v1  ;;  %v986_v32 = vmul.f32 %v2225_v61, %v2032_v51  ;;  %v2227_v53 = vpop.eup %2226 }
 0x15b   : > { %2238 = vtanh.f32 %v968_v16  ;;  %v984_v54 = vmul.f32 %v2227_v53, %v2032_v51 }
 0x15c   : > { %v2229_v19 = vpop.eup %2228  ;;  %996 = vadd.xlane.f32.xlu0 %v986_v32 }
 0x15d   : > { %v985_v25 = vmul.f32 %v2229_v19, %v2032_v51  ;;  %v2231_v56 = vpop.eup %2230 }
 0x15e   : > { %v987_v6 = vmul.f32 %v2231_v56, %v2032_v51 }
 0x15f   : > { %994 = vadd.xlane.f32.xlu1 %v985_v25 }
 0x160   : > { %992 = vadd.xlane.f32.xlu0 %v984_v54 }
 0x161   : > { %v2233_v57 = vpop.eup %2232 }
 0x162   : > { %v990_v59 = vmul.f32 %v2233_v57, %v2032_v51  ;;  %v2235_v55 = vpop.eup %2234 }
 0x163   : > { %v988_v62 = vmul.f32 %v2235_v55, %v2032_v51 }
 0x164   : > { %v2237_v7 = vpop.eup %2236  ;;  %998 = vadd.xlane.f32.xlu0 %v987_v6  ;;  %1004 = vadd.xlane.f32.xlu1 %v990_v59 }
 0x165   : > { %v989_v60 = vmul.f32 %v2237_v7, %v2032_v51  ;;  %v2239_v31 = vpop.eup %2238 }
 0x166   : > { %v991_v2 = vmul.f32 %v2239_v31, %v2032_v51 }
 0x168   : > { %1000 = vadd.xlane.f32.xlu1 %v988_v62  ;;  %1002 = vadd.xlane.f32.xlu0 %v989_v60 }
 0x16c   : > { %1006 = vadd.xlane.f32.xlu0 %v991_v2 }
 0x179   : > { %1015 = vperm.xlu1 %2209, %v2033_v15  }
 0x1e9   : > { %v997_v17 = vpop.xlane.xlu0 %996 }
 0x1ec   : > { %v995_v24 = vpop.xlane.xlu1 %994 }
 0x1ed   : > { %v993_v27 = vpop.xlane.xlu0 %992 }
 0x1f1   : > { %v999_v10 = vpop.xlane.xlu0 %998  ;;  %v1005_v18 = vpop.xlane.xlu1 %1004 }
 0x1f5   : > { %v1001_v39 = vpop.xlane.xlu1 %1000  ;;  %v1003_v14 = vpop.xlane.xlu0 %1002 }
 0x1f9   : > { %v1016_v29 = vpop.permute.xlu1 %1015  ;;  %v1007_v30 = vpop.xlane.xlu0 %1006 }
 0x1fa   : > { %v1018_v21 = vadd.f32 %v1016_v29, %v993_v27  ;;  %v1019_v3 = vadd.f32 %v1016_v29, %v995_v24  ;;  %v1020_v23 = vadd.f32 %v1016_v29, %v997_v17  ;;  %v1021_v41 = vadd.f32 %v1016_v29, %v999_v10 }
 0x1fb   : > { %v1022_v63 = vadd.f32 %v1016_v29, %v1001_v39  ;;  %v1023_v42 = vadd.f32 %v1016_v29, %v1003_v14  ;;  %v1024_v40 = vadd.f32 %v1016_v29, %v1005_v18  ;;  %v1025_v52 = vadd.f32 %v1016_v29, %v1007_v30 }
 0x1fc   : > { %v1039_v33 = vrot.slane %v1018_v21, %v2612_v4  ;;  %v1043_v43 = vrot.slane %v1019_v3, %v2612_v4  ;;  %v1047_v5 = vrot.slane %v1020_v23, %v2612_v4  ;;  %v1051_v20 = vrot.slane %v1021_v41, %v2612_v4 }
 0x1fd   : > { %v1055_v0 = vrot.slane %v1022_v63, %v2612_v4  ;;  %v1059_v28 = vrot.slane %v1023_v42, %v2612_v4  ;;  %v1063_v16 = vrot.slane %v1024_v40, %v2612_v4  ;;  %v1067_v51 = vrot.slane %v1025_v52, %v2612_v4 }
 0x1fe   : > { %v1069_v45 = vsel %vm1068_vm0, %v1043_v43, %v1039_v33 }
 0x1ff   : > { %v1071_v48 = vsel %vm1070_vm1, %v1047_v5, %v1069_v45 }
 0x200   : > { %v1073_v49 = vsel %vm1072_vm2, %v1051_v20, %v1071_v48 }
 0x201   : > { %v1075_v58 = vsel %vm1074_vm3, %v1055_v0, %v1073_v49 }
 0x202   : > { %v1077_v1 = vsel %vm1076_vm4, %v1059_v28, %v1075_v58 }
 0x203   : > { %v1079_v61 = vsel %vm1078_vm5, %v1063_v16, %v1077_v1 }
 0x204   : > { %v1081_v32 = vsel %vm1080_vm6, %v1067_v51, %v1079_v61 }
 0x205   : > { %v1084_v53 = vsel %vm1083_vm7, %v1081_v32, -inf }
 0x206   : > { %1085 = vmax.xlane.f32.xlu0 %v1084_v53 }
 0x293   : > { %v1086_v19 = vpop.xlane.xlu0 %1085 }
 0x294   : > { %v1091_v25 = vrot.slane %v1086_v19, %v2627_v8  ;;  %v1095_v54 = vrot.slane %v1086_v19, %v2639_v13  ;;  %v1099_v56 = vrot.slane %v1086_v19, %v2630_v9  ;;  %v1103_v59 = vrot.slane %v1086_v19, %v2660_v22 }
 0x295   : > { %v1107_v62 = vrot.slane %v1086_v19, %v2667_v26  ;;  %v1111_v15 = vrot.slane %v1086_v19, %v2680_v34  ;;  %v1115_v27 = vrot.slane %v1086_v19, %v2704_v44  ;;  %v1119_v29 = vrot.slane %v1086_v19, %v2718_v50 }
 0x296   : > { %v1128_v57 = vsub.f32 %v1018_v21, %v1091_v25  ;;  %v1129_v6 = vsub.f32 %v1019_v3, %v1095_v54  ;;  %v1130_v55 = vsub.f32 %v1020_v23, %v1099_v56  ;;  %v1131_v31 = vsub.f32 %v1021_v41, %v1103_v59 }
 0x297   : > { %v1132_v17 = vsub.f32 %v1022_v63, %v1107_v62  ;;  %v1133_v10 = vsub.f32 %v1023_v42, %v1111_v15  ;;  %v1134_v21 = vsub.f32 %v1024_v40, %v1115_v27  ;;  %v1135_v30 = vsub.f32 %v1025_v52, %v1119_v29 }
 0x298   : > { %v1136_v7 = vmul.f32 1.442695, %v1128_v57  ;;  %v1138_v60 = vmul.f32 1.442695, %v1129_v6  ;;  %v1140_v2 = vmul.f32 1.442695, %v1130_v55 }
 0x299   : > { %v1142_v24 = vmul.f32 1.442695, %v1131_v31  ;;  %v1144_v18 = vmul.f32 1.442695, %v1132_v17  ;;  %v1146_v3 = vmul.f32 1.442695, %v1133_v10 }
 0x29a   : > { %2240 = vpow2.f32 %v1136_v7  ;;  %v1148_v41 = vmul.f32 1.442695, %v1134_v21  ;;  %v1150_v42 = vmul.f32 1.442695, %v1135_v30 }
 0x29b   : > { %2242 = vpow2.f32 %v1138_v60 }
 0x29c   : > { %2244 = vpow2.f32 %v1140_v2 }
 0x29d   : > { %2246 = vpow2.f32 %v1142_v24 }
 0x29e   : > { %2248 = vpow2.f32 %v1144_v18 }
 0x29f   : > { %2250 = vpow2.f32 %v1146_v3 }
 0x2a0   : > { %2252 = vpow2.f32 %v1148_v41 }
 0x2a1   : > { %2254 = vpow2.f32 %v1150_v42 }
 0x2a4   : > { %v2241_v39 = vpop.eup %2240 }
 0x2a5   : > { %v2243_v14 = vpop.eup %2242  ;;  %1161 = vperm.xlu0 %2210, %v2241_v39  }
 0x2a6   : > { %1164 = vperm.xlu1 %2209, %v2243_v14   ;;  %v2245_v23 = vpop.eup %2244 }
 0x2a7   : > { %v2247_v63 = vpop.eup %2246 }
 0x2a8   : > { %v2780_v33 = vpop.eup %2248 }
 0x2a9   : > { %v2251_v43 = vpop.eup %2250 }
 0x2aa   : > { %1167 = vperm.xlu1 %2209, %v2245_v23   ;;  %v2783_v5 = vpop.eup %2252 }
 0x2ab   : > { %v2255_v40 = vpop.eup %2254 }
 0x2ae   : > { %1170 = vperm.xlu1 %2209, %v2247_v63  }
 0x2b2   : > { %1173 = vperm.xlu1 %2209, %v2780_v33  }
 0x2b6   : > { %1176 = vperm.xlu1 %2209, %v2251_v43  }
 0x2ba   : > { %1179 = vperm.xlu1 %2209, %v2783_v5  }
 0x2be   : > { %1182 = vperm.xlu1 %2209, %v2255_v40  }
 0x324   : > { %v1162_v48 = vpop.permute.xlu0 %1161 }
 0x325   : > { %v1165_v52 = vpop.permute.xlu1 %1164  ;;  %v1187_v16 = vrot.slane %v1162_v48, %v2612_v4 }
 0x326   : > { %v1191_v49 = vrot.slane %v1165_v52, %v2612_v4 }
 0x328   : > { %v1216_v32 = vsel %vm1068_vm0, %v1191_v49, %v1187_v16  ;;  %v1429_v16 = vsel %vm1371_vm8, %v2636_v12, 0 }
 0x329   : > { %v1168_v20 = vpop.permute.xlu1 %1167 }
 0x32a   : > { %v1195_v58 = vrot.slane %v1168_v20, %v2612_v4 }
 0x32c   : > { %v1217_v19 = vsel %vm1070_vm1, %v1195_v58, %v1216_v32  ;;  %v1485_v32 = vsel %vm1371_vm8, %v2683_v35, 0 }
 0x32d   : > { %v1171_v45 = vpop.permute.xlu1 %1170 }
 0x32e   : > { %v1199_v51 = vrot.slane %v1171_v45, %v2612_v4 }
 0x330   : > { %v1218_v54 = vsel %vm1072_vm2, %v1199_v51, %v1217_v19 }
 0x331   : > { %v1174_v0 = vpop.permute.xlu1 %1173 }
 0x332   : > { %v1203_v1 = vrot.slane %v1174_v0, %v2612_v4 }
 0x334   : > { %v1219_v56 = vsel %vm1074_vm3, %v1203_v1, %v1218_v54  ;;  %v1541_v54 = vsel %vm1371_vm8, %v2686_v36, 0 }
 0x335   : > { %v1177_v28 = vpop.permute.xlu1 %1176 }
 0x336   : > { %v1207_v53 = vrot.slane %v1177_v28, %v2612_v4 }
 0x338   : > { %v1220_v6 = vsel %vm1076_vm4, %v1207_v53, %v1219_v56 }
 0x339   : > { %v1180_v61 = vpop.permute.xlu1 %1179 }
 0x33a   : > { %v1211_v25 = vrot.slane %v1180_v61, %v2612_v4 }
 0x33c   : > { %v1221_v55 = vsel %vm1078_vm5, %v1211_v25, %v1220_v6 }
 0x33d   : > { %v1183_v57 = vpop.permute.xlu1 %1182 }
 0x33e   : > { %v1215_v59 = vrot.slane %v1183_v57, %v2612_v4 }
 0x340   : > { %v1222_v7 = vsel %vm1080_vm6, %v1215_v59, %v1221_v55 }
 0x341   : > { %v1224_v60 = vsel %vm1083_vm7, %v1222_v7, 0.0  ;;  %v1597_v7 = vsel %vm1371_vm8, %v2689_v37, 0 }
 0x342   : > { %1225 = vadd.xlane.f32.xlu1 %v1224_v60 }
 0x3cf   : > { %v1226_v62 = vpop.xlane.xlu1 %1225 }
 0x3d0   : > { %2256 = vrcp.f32 %v1226_v62 }
 0x3da   : > { %v2257_v31 = vpop.eup %2256 }
 0x3db   : > { %v1232_v2 = vrot.slane %v2257_v31, %v2627_v8  ;;  %v1236_v15 = vrot.slane %v2257_v31, %v2639_v13  ;;  %v1252_v24 = vrot.slane %v2257_v31, %v2680_v34  ;;  %v1240_v10 = vrot.slane %v2257_v31, %v2630_v9 }
 0x3dc   : > { %v1260_v29 = vrot.slane %v2257_v31, %v2718_v50  ;;  %v1244_v21 = vrot.slane %v2257_v31, %v2660_v22  ;;  %v1248_v34 = vrot.slane %v2257_v31, %v2667_v26  ;;  %v1373_v22 = vsel %vm1371_vm8, %v2633_v11, 0 }
 0x3dd   : > { %v1269_v17 = vmul.f32 %v2241_v39, %v1232_v2  ;;  %v1270_v27 = vmul.f32 %v2243_v14, %v1236_v15  ;;  %v1274_v3 = vmul.f32 %v2251_v43, %v1252_v24  ;;  %v1271_v42 = vmul.f32 %v2245_v23, %v1240_v10 }
 0x3de   : > { %v1276_v8 = vmul.f32 %v2255_v40, %v1260_v29  ;;  %v1272_v13 = vmul.f32 %v2247_v63, %v1244_v21  ;;  %v2394_v39 = vmov 0.0   ;;  %v1273_v23 = vmul.f32 %v2780_v33, %v1248_v34 }
 0x3df   : > { %1286 = vperm.xlu1 %2209, %v1269_v17   ;;  %v1350_v18 = vpack.c.bf16 %v1269_v17, %v1269_v17  ;;  %v1351_v41 = vpack.c.bf16 %v1270_v27, %v1270_v27  ;;  %2098 = vmatprep.subr.bf16.mxu1 %v2394_v39  ;;  %v1352_v50 = vpack.c.bf16 %v1271_v42, %v1271_v42  ;;  %v1709_v33 = vsel %vm1371_vm8, %v2709_v46, 0 }
 0x3e0   : > { %2134 = vmatprep.subr.bf16.mxu0 %v2394_v39  ;;  %2099 = vmatpush3.bf16.msra.mxu1 %v1373_v22  ;;  %v1353_v14 = vpack.c.bf16 %v1272_v13, %v1272_v13  ;;  %v1354_v43 = vpack.c.bf16 %v1273_v23, %v1273_v23  ;;  %v1256_v11 = vrot.slane %v2257_v31, %v2704_v44  ;;  %v1653_v15 = vsel %vm1371_vm8, %v2692_v38, 0 }
 0x3e1   : > { %v1359_v30 = vunpack.c.l.b16 %v1350_v18  ;;  %v1416_v9 = vunpack.c.l.b16 %v1351_v41  ;;  %2100 = vmatprep.mubr.msk.bf16.mxu1 %vm2395_vm9, %v2394_v39  ;;  %2104 = vmatprep.subr.bf16.mxu1 %v2394_v39  ;;  %v1472_v26 = vunpack.c.l.b16 %v1352_v50  ;;  %v1355_v52 = vpack.c.bf16 %v1274_v3, %v1274_v3 }
 0x3e2   : > { %2136 = vmatprep.mubr.msk.bf16.mxu0 %vm2395_vm9, %v2394_v39  ;;  %v1528_v63 = vunpack.c.l.b16 %v1353_v14  ;;  %v1584_v40 = vunpack.c.l.b16 %v1354_v43  ;;  %v1275_v20 = vmul.f32 %v2783_v5, %v1256_v11  ;;  %v1357_v28 = vpack.c.bf16 %v1276_v8, %v1276_v8  ;;  %2135 = vmatpush3.bf16.msra.mxu0 %v1709_v33 }
 0x3e3   : > { %1301 = vperm.xlu1 %2209, %v1274_v3   ;;  %1361 = vperm.xlu0 %2210, %v1359_v30   ;;  %v1640_v45 = vunpack.c.l.b16 %v1355_v52  ;;  %v1765_v3 = vsel %vm1371_vm8, %v2712_v47, 0 }
 0x3e4   : > { %v1356_v0 = vpack.c.bf16 %v1275_v20, %v1275_v20  ;;  %v1752_v49 = vunpack.c.l.b16 %v1357_v28 }
 0x3e6   : > { %v1696_v48 = vunpack.c.l.b16 %v1356_v0 }
 0x3e7   : > { %1307 = vperm.xlu1 %2209, %v1276_v8   ;;  %1418 = vperm.xlu0 %2210, %v1416_v9  }
 0x3eb   : > { %1474 = vperm.xlu0 %2210, %v1472_v26  }
 0x3ef   : > { %1530 = vperm.xlu0 %2210, %v1528_v63  }
 0x3f3   : > { %1586 = vperm.xlu0 %2210, %v1584_v40  }
 0x3f7   : > { %1642 = vperm.xlu0 %2210, %v1640_v45  }
 0x3fb   : > { %1698 = vperm.xlu0 %2210, %v1696_v48  }
 0x3ff   : > { %1754 = vperm.xlu0 %2210, %v1752_v49  }
 0x403   : > { %1289 = vperm.xlu0 %2210, %v1270_v27  }
 0x407   : > { %1292 = vperm.xlu0 %2210, %v1271_v42  }
 0x40b   : > { %1295 = vperm.xlu0 %2210, %v1272_v13  }
 0x40f   : > { %1298 = vperm.xlu0 %2210, %v1273_v23  }
 0x413   : > { %1304 = vperm.xlu0 %2210, %v1275_v20  }
 0x45e   : > { %v1287_v31 = vpop.permute.xlu1 %1286 }
 0x45f   : > { %v1312_v29 = vrot.slane %v1287_v31, %v2612_v4 }
 0x462   : > { %v1362_v44 = vpop.permute.xlu0 %1361  ;;  %v1302_v10 = vpop.permute.xlu1 %1301 }
 0x463   : > { %v1366_v5 = vrot.slane %v1362_v44, %v2612_v4  ;;  %v1332_v50 = vrot.slane %v1302_v10, %v2612_v4 }
 0x465   : > { %v1367_v58 = vpack.c.b16 %v1366_v5, %v1366_v5 }
 0x466   : > { %v1419_v51 = vpop.permute.xlu0 %1418  ;;  %v1308_v34 = vpop.permute.xlu1 %1307 }
 0x467   : > { %2101 = vmatmul.mubr.msk.bf16.vlgmr.msra.gmra.mrb[0].mxu1 %vm1083_vm7, %v1367_v58  ;;  %v1423_v46 = vrot.slane %v1419_v51, %v2612_v4  ;;  %v1340_v14 = vrot.slane %v1308_v34, %v2612_v4 }
 0x468   : > { %2105 = vmatpush3.bf16.msra.mxu1 %v1429_v16  ;;  %2106 = vmatprep.mubr.msk.bf16.mxu1 %vm2395_vm9, %v2394_v39 }
 0x469   : > { %2110 = vmatprep.subr.bf16.mxu1 %v2394_v39  ;;  %v1424_v61 = vpack.c.b16 %v1423_v46, %v1423_v46 }
 0x46a   : > { %v1475_v1 = vpop.permute.xlu0 %1474 }
 0x46b   : > { %v1479_v12 = vrot.slane %v1475_v1, %v2612_v4 }
 0x46d   : > { %v1480_v25 = vpack.c.b16 %v1479_v12, %v1479_v12 }
 0x46e   : > { %v1531_v53 = vpop.permute.xlu0 %1530 }
 0x46f   : > { %2107 = vmatmul.mubr.msk.bf16.vlgmr.msra.gmra.mrb[4].mxu1 %vm1083_vm7, %v1424_v61  ;;  %v1535_v35 = vrot.slane %v1531_v53, %v2612_v4 }
 0x470   : > { %2111 = vmatpush3.bf16.msra.mxu1 %v1485_v32  ;;  %2112 = vmatprep.mubr.msk.bf16.mxu1 %vm2395_vm9, %v2394_v39 }
 0x471   : > { %2116 = vmatprep.subr.bf16.mxu1 %v2394_v39  ;;  %v1536_v59 = vpack.c.b16 %v1535_v35, %v1535_v35 }
 0x472   : > { %v1587_v19 = vpop.permute.xlu0 %1586 }
 0x473   : > { %v1591_v60 = vrot.slane %v1587_v19, %v2612_v4 }
 0x475   : > { %v1592_v2 = vpack.c.b16 %v1591_v60, %v1591_v60 }
 0x476   : > { %v1643_v56 = vpop.permute.xlu0 %1642 }
 0x477   : > { %2113 = vmatmul.mubr.msk.bf16.vlgmr.msra.gmra.mrb[8].mxu1 %vm1083_vm7, %v1480_v25  ;;  %v1647_v17 = vrot.slane %v1643_v56, %v2612_v4 }
 0x478   : > { %2117 = vmatpush3.bf16.msra.mxu1 %v1541_v54  ;;  %2118 = vmatprep.mubr.msk.bf16.mxu1 %vm2395_vm9, %v2394_v39 }
 0x479   : > { %2122 = vmatprep.subr.bf16.mxu1 %v2394_v39  ;;  %v1648_v21 = vpack.c.b16 %v1647_v17, %v1647_v17 }
 0x47a   : > { %v1699_v57 = vpop.permute.xlu0 %1698 }
 0x47b   : > { %v1703_v6 = vrot.slane %v1699_v57, %v2612_v4 }
 0x47d   : > { %v1704_v55 = vpack.c.b16 %v1703_v6, %v1703_v6 }
 0x47e   : > { %v1755_v36 = vpop.permute.xlu0 %1754 }
 0x47f   : > { %2119 = vmatmul.mubr.msk.bf16.vlgmr.msra.gmra.mrb[12].mxu1 %vm1083_vm7, %v1536_v59  ;;  %2137 = vmatmul.mubr.msk.bf16.vlgmr.msra.gmra.mrb[8].mxu0 %vm1083_vm7, %v1704_v55  ;;  %v1759_v9 = vrot.slane %v1755_v36, %v2612_v4 }
 0x480   : > { %2123 = vmatpush3.bf16.msra.mxu1 %v1597_v7  ;;  %2124 = vmatprep.mubr.msk.bf16.mxu1 %vm2395_vm9, %v2394_v39 }
 0x481   : > { %2128 = vmatprep.subr.bf16.mxu1 %v2394_v39  ;;  %v1760_v63 = vpack.c.b16 %v1759_v9, %v1759_v9 }
 0x482   : > { %v1290_v62 = vpop.permute.xlu0 %1289 }
 0x483   : > { %v1316_v24 = vrot.slane %v1290_v62, %v2612_v4 }
 0x485   : > { %v1341_v30 = vsel %vm1068_vm0, %v1316_v24, %v1312_v29 }
 0x486   : > { %v1293_v37 = vpop.permute.xlu0 %1292 }
 0x487   : > { %2125 = vmatmul.mubr.msk.bf16.vlgmr.msra.gmra.mrb[16].mxu1 %vm1083_vm7, %v1592_v2  ;;  %v1320_v18 = vrot.slane %v1293_v37, %v2612_v4 }
 0x488   : > { %2129 = vmatpush3.bf16.msra.mxu1 %v1653_v15  ;;  %2130 = vmatprep.mubr.msk.bf16.mxu1 %vm2395_vm9, %v2394_v39 }
 0x489   : > { %2140 = vmatprep.subr.bf16.mxu1 %v2394_v39  ;;  %v1342_v42 = vsel %vm1070_vm1, %v1320_v18, %v1341_v30 }
 0x48a   : > { %v1296_v27 = vpop.permute.xlu0 %1295 }
 0x48b   : > { %v1324_v38 = vrot.slane %v1296_v27, %v2612_v4 }
 0x48d   : > { %v1343_v13 = vsel %vm1072_vm2, %v1324_v38, %v1342_v42 }
 0x48e   : > { %v1299_v41 = vpop.permute.xlu0 %1298 }
 0x48f   : > { %v1328_v8 = vrot.slane %v1299_v41, %v2612_v4  ;;  %2131 = vmatmul.mubr.msk.bf16.vlgmr.msra.gmra.mrb[20].mxu1 %vm1083_vm7, %v1648_v21 }
 0x490   : > { %2141 = vmatpush3.bf16.msra.mxu1 %v1765_v3  ;;  %2142 = vmatprep.mubr.msk.bf16.mxu1 %vm2395_vm9, %v2394_v39 }
 0x491   : > { %v1344_v47 = vsel %vm1074_vm3, %v1328_v8, %v1343_v13 }
 0x492   : > { %v1305_v22 = vpop.permute.xlu0 %1304  ;;  %v1345_v23 = vsel %vm1076_vm4, %v1332_v50, %v1344_v47 }
 0x493   : > { %v1336_v26 = vrot.slane %v1305_v22, %v2612_v4 }
 0x495   : > { %v1346_v39 = vsel %vm1078_vm5, %v1336_v26, %v1345_v23 }
 0x496   : > { %v1347_v43 = vsel %vm1080_vm6, %v1340_v14, %v1346_v39 }
 0x497   : > { %1349 = vst.msk [vmem:[%s475_s22] sm:$0xff] %vm1083_vm7, %v1347_v43  ;;  %2143 = vmatmul.mubr.msk.bf16.vlgmr.msra.gmra.mrb[24].mxu1 %vm1083_vm7, %v1760_v63 }
 0x53a   : > { %v1409_v11 = vpop.f32.mrb[0].mxu1 }
 0x53b   : > { %v2102_v40 = vpop.f32.mrb[1].mxu1 }
 0x53c   : > { %v1412_v52 = vpop.f32.mrb[2].mxu1 }
 0x53d   : > { %v2103_v20 = vpop.f32.mrb[3].mxu1 }
 0x542   : > { %v1465_v4 = vpop.f32.mrb[4].mxu1 }
 0x543   : > { %v1815_v45 = vrot.slane %v1465_v4, 7  ;;  %v2108_v0 = vpop.f32.mrb[5].mxu1 }
 0x544   : > { %v1468_v48 = vpop.f32.mrb[6].mxu1 }
 0x545   : > { %v1816_v28 = vsel %vm1068_vm0, %v1815_v45, %v1409_v11  ;;  %v2109_v49 = vpop.f32.mrb[7].mxu1 }
 0x54a   : > { %v1521_v33 = vpop.f32.mrb[8].mxu1 }
 0x54b   : > { %v1817_v44 = vrot.slane %v1521_v33, 6  ;;  %v2114_v5 = vpop.f32.mrb[9].mxu1 }
 0x54c   : > { %v1524_v16 = vpop.f32.mrb[10].mxu1 }
 0x54d   : > { %v1818_v58 = vsel %vm1070_vm1, %v1817_v44, %v1816_v28  ;;  %v2115_v51 = vpop.f32.mrb[11].mxu1 }
 0x552   : > { %v1577_v46 = vpop.f32.mrb[12].mxu1  ;;  %v1745_v1 = vpop.f32.mrb[8].mxu0 }
 0x553   : > { %v1819_v61 = vrot.slane %v1577_v46, 5  ;;  %v2120_v32 = vpop.f32.mrb[13].mxu1  ;;  %v2138_v53 = vpop.f32.mrb[9].mxu0  ;;  %v1825_v31 = vrot.slane %v1745_v1, 2 }
 0x554   : > { %v1580_v12 = vpop.f32.mrb[14].mxu1  ;;  %v1748_v19 = vpop.f32.mrb[10].mxu0 }
 0x555   : > { %v1820_v25 = vsel %vm1072_vm2, %v1819_v61, %v1818_v58  ;;  %v2121_v54 = vpop.f32.mrb[15].mxu1  ;;  %v2139_v56 = vpop.f32.mrb[11].mxu0 }
 0x55a   : > { %v1633_v35 = vpop.f32.mrb[16].mxu1 }
 0x55b   : > { %v1821_v57 = vrot.slane %v1633_v35, 4  ;;  %v2126_v6 = vpop.f32.mrb[17].mxu1 }
 0x55c   : > { %v1636_v59 = vpop.f32.mrb[18].mxu1 }
 0x55d   : > { %v1822_v55 = vsel %vm1074_vm3, %v1821_v57, %v1820_v25  ;;  %v2127_v7 = vpop.f32.mrb[19].mxu1 }
 0x562   : > { %v1689_v36 = vpop.f32.mrb[20].mxu1 }
 0x563   : > { %v1823_v60 = vrot.slane %v1689_v36, 3  ;;  %v2132_v62 = vpop.f32.mrb[21].mxu1 }
 0x564   : > { %v1692_v2 = vpop.f32.mrb[22].mxu1 }
 0x565   : > { %v1824_v15 = vsel %vm1076_vm4, %v1823_v60, %v1822_v55  ;;  %v2133_v37 = vpop.f32.mrb[23].mxu1 }
 0x566   : > { %v1826_v17 = vsel %vm1078_vm5, %v1825_v31, %v1824_v15 }
 0x56a   : > { %v1801_v24 = vpop.f32.mrb[24].mxu1 }
 0x56b   : > { %v1827_v27 = vrot.slane %v1801_v24, 1  ;;  %v2144_v10 = vpop.f32.mrb[25].mxu1 }
 0x56c   : > { %v1804_v18 = vpop.f32.mrb[26].mxu1 }
 0x56d   : > { %v1828_v29 = vsel %vm1080_vm6, %v1827_v27, %v1826_v17  ;;  %v2145_v38 = vpop.f32.mrb[27].mxu1 }
 0x56e   : > { %1830 = vst [vmem:[%s447_s20] sm:$0xff] %v1828_v29 }
 0x56f   : > { %2329 = shalt.err (!%p2326_p2)
}
 0x570   : > { %s2330_s30 = scalar_lea.hbm %s2900_s19, 128  ;;  %s2334_s22 = scalar_lea.hbm %s2954_s9, 256 }
 0x571   : > { %p2331_p5 = scmp.ne.s32.totalorder %s2900_s19, %s2330_s30  ;;  %p2335_p1 = scmp.lt.u32.totalorder %s2900_s19, %s2954_s9 }
 0x572   : > { %p2336_p4 = scmp.lt.u32.totalorder %s2334_s22, %s2330_s30  ;;  %p2338_p8 = scmp.lt.u32.totalorder %s2330_s30, %s2900_s19 }
 0x573   : > { %p2332_p0 = pnand %p2331_p5, %p2546_p12 }
 0x574   : > { %p2337_p6 = por %p2336_p4, %p2335_p1 }
 0x575   : > { %p2333_p11 = pneg %p2332_p0 }
 0x576   : > { %p2339_p10 = por %p2338_p8, %p2337_p6 }
 0x578   : > { %p2340_p13 = pnand %p2339_p10, %p2333_p11 }
 0x57a   : > { %2343 = shalt.err (!%p2340_p13)
}
 0x57b   : > { %2152 = dma.vmem_to_hbm [thread:$0]  (%p2546_p12), %s2902_s11, 128, %s2900_s19, %s1832_s8  }
 0x57c PF: > { %s2975_s28 = sld [smem:[#allocation12_spill]]  ;;  %s1864_s29 = sand.u32 1, %s2374_s15  }
 0x57d   : > { %p2977_p7 = scmp.ge.s32.totalorder %s2386_s18, 2  ;;  %s1865_s12 = scalar_lea.sflag [#allocation5], %s1864_s29 }
 0x582   : > { %p2976_p3 = scmp.ne.s32.totalorder %s2975_s28, 0 }
 0x584   : > { %p2163_p9 = pnand %p2977_p7, %p2976_p3 }
 0x586   : > { %2369 = dma.done.wait (!%p2163_p9), %s1865_s12, 128  }
 0x587   : > { %2371 = vsyncadd (!%p2163_p9), %s1865_s12, 4294967168  ;;  %s2978_s18 = sld [smem:[#allocation13_spill]]  ;;  %s2979_s15 = smov %s2378_s16 }
 0x588   : > { %s2980_s16 = smov %s2382_s17  ;;  %s2981_s17 = smov %s2542_s13 }
 0x58d   : > { %p27_p2 = scmp.ge.s32.totalorder %s2978_s18, 4  }
 0x58f   :  { %29 = sbr.rel (!%p27_p2) target bundleno = 9 (0x9), region = 129 }
 0x596   :  { %1877 = vsyncpa [#allocation4], 1 }
 0x597   :  { %1879 = vsyncpa [#allocation4 + $0x1], 1 }
 0x598   :  { %1880 = vsyncpa [#allocation7], 1 }
 0x599   :  { %1881 = vsyncpa [#allocation5], 1 }
 0x59a   :  { %1883 = vsyncpa [#allocation5 + $0x1], 1 }

// kernel: tpu_custom_call.1
= control target key start
LH: loop header
LB: loop body
LE: loop exit
PB: predicated region body
PF: predicated region fallthrough
CT: control target
= control target key end

     0   :  { %s2945_s0 = inlined_call_operand.hbm [shape: f32[16,128], index: 0, kind: input, shape index: {}]   ;;  %s2946_s1 = inlined_call_operand.vmem [shape: bf16[16,8,128], index: 1, kind: input, shape index: {}]   ;;  %s2947_s2 = inlined_call_operand.vmem [shape: f32[16,8], index: 2, kind: input, shape index: {}]   ;;  %s2948_s3 = inlined_call_operand.vmem [shape: f32[16,8], index: 3, kind: input, shape index: {}]   ;;  %s2949_s4 = inlined_call_operand.vmem [shape: f32[16,8], index: 4, kind: input, shape index: {}]   ;;  %s2950_s5 = inlined_call_operand.hbm [shape: bf16[128,128], index: 5, kind: input, shape index: {}]   ;;  %s2951_s6 = inlined_call_operand.vmem [shape: f32[3,128], index: 6, kind: input, shape index: {}]   ;;  %s2952_s7 = inlined_call_operand.vmem [shape: f32[1,128], index: 7, kind: input, shape index: {}]   ;;  %s2953_s8 = inlined_call_operand.<no memory space> [shape: f32[1,1], index: 8, kind: input, shape index: {}]   ;;  %s2954_s9 = inlined_call_operand.hbm [shape: f32[16,128], index: 9, kind: output, shape index: {0}]   ;;  %s2955_s10 = inlined_call_operand.vmem [shape: f32[16,8], index: 10, kind: output, shape index: {1}]  }
   0x1   :  { %v16_v0 = vstv %s2953_s8 }
   0x2   :  { %17 = vst [vmem:[#allocation2] sm:$0x1] %v16_v0 }
   0x3   :  { %18 = vsyncpa [#allocation4], 0 }
   0x4   :  { %20 = vsyncpa [#allocation4 + $0x1], 0 }
   0x5   :  { %21 = vsyncpa [#allocation7], 0 }
   0x6   :  { %22 = vsyncpa [#allocation5], 0 }
   0x7   :  { %24 = vsyncpa [#allocation5 + $0x1], 0  ;;  %s2455_s15 = smov 0   ;;  %s2457_s16 = smov 0  }
   0x8   :  { %s2459_s17 = smov 0   ;;  %s2461_s18 = smov 0  }
   0x9 LB: > { %s2476_s8 = sadd.s32 4294967295, %s2386_s18   ;;  %s2004_s19 = sadd.s32 4294967294, %s2386_s18   ;;  %s2386_s18 = sphi %s2461_s18, %s2978_s18   ;;  %s2382_s17 = sphi %s2459_s17, %s2981_s17   ;;  %s2378_s16 = sphi %s2457_s16, %s2980_s16   ;;  %s2374_s15 = sphi %s2455_s15, %s2979_s15  }
   0xa   : > { %p50_p0 = scmp.ne.s32.totalorder %s2378_s16, %s2374_s15  ;;  %p2956_p1 = scmp.eq.s32.totalorder %s2476_s8, 0 }
   0xb   : > { %p268_p3 = scmp.eq.s32.totalorder %s2004_s19, 1  ;;  %p2005_p5 = scmp.ge.s32.totalorder %s2386_s18, 1 }
   0xc   : > { %p2485_p4 = por %p2956_p1, %p50_p0  ;;  %p301_p7 = scmp.lt.s32.totalorder %s2386_s18, 3 }
   0xd   : > { %p2490_p6 = por %p268_p3, %p50_p0  ;;  %s2388_s23 = smov [#allocation6]  }
   0xe   : > { %s2962_s20 = scalar_select %p2485_p4, 1, 0 }
   0xf   : > { %s2963_s21 = scalar_select %p2490_p6, 1, 0 }
  0x10   : > { %p2495_p8 = pnand %p2005_p5, %p301_p7  ;;  %s313_s24 = sshll.u32 %s2388_s23, 4  ;;  %s2499_s24 = int_to_ptr.vmem [resolvable:$true] %s313_s24 }
  0x11   : > { %2964 = sst [smem:[#allocation12_spill]] %s2963_s21  ;;  %s2511_s26 = sadd.s32 1, %s2386_s18  }
  0x12   : > { %s2965_s22 = scalar_select %p2495_p8, 1, 0 }
  0x13   : > { %p2154_p9 = pneg %p2495_p8  ;;  %2967 = sst [smem:[#allocation13_spill]] %s2511_s26 }
  0x14   : > { %s37_s27 = sadd.s32 1, %s2382_s17  ;;  %s34_s28 = ssub.s32 %s2386_s18, %s2511_s26 }
  0x15   : > { %p2506_p11 = pnand %p2154_p9, %p2956_p1  ;;  %s2258_s11 = scalar_lea.hbm %s2950_s5, 1024 }
  0x16   : > { %p2259_p12 = scmp.ne.s32.totalorder %s2950_s5, %s2258_s11  ;;  %p2265_p5 = scmp.lt.u32.totalorder %s2258_s11, %s2950_s5 }
  0x17   : > { %p2260_p13 = pneg %p2506_p11 }
  0x19   : > { %p2261_p0 = pnand %p2260_p13, %p2259_p12 }
  0x1b   : > { %p2262_p3 = pneg %p2261_p0 }
  0x1d   : > { %p2267_p7 = pnand %p2265_p5, %p2262_p3 }
  0x1f   : > { %2270 = shalt.err (!%p2267_p7)
}
  0x20   : > { %s2271_s23 = scalar_lea.vmem %s2499_s24, 1024  ;;  %p2279_p2 = scmp.lt.s32.totalorder %s2499_s24, %s2499_s24 }
  0x21   : > { %p2272_p9 = scmp.ne.s32.totalorder %s2499_s24, %s2271_s23  ;;  %p2280_p6 = scmp.lt.s32.totalorder %s2271_s23, %s2271_s23 }
  0x23   : > { %p2274_p10 = pnand %p2272_p9, %p2260_p13  ;;  %p2281_p4 = por %p2280_p6, %p2279_p2 }
  0x25   : > { %p2275_p1 = pneg %p2274_p10 }
  0x27   : > { %p2282_p8 = pnand %p2281_p4, %p2275_p1 }
  0x29   : > { %2285 = shalt.err (!%p2282_p8)
}
  0x2a   : > { %s2389_s29 = smov 64   ;;  %s2390_s30 = smov 4  }
  0x2b   : > { %2157 = dma.hbm_to_vmem [thread:$0]  (!%p2506_p11), %s2950_s5, 1024, %s2499_s24, [#allocation7], %s2389_s29, %s2389_s29, %s2390_s30  }
  0x2c   : > { %p35_p2 = scmp.eq.s32.totalorder %s34_s28, 0  ;;  %p44_p1 = scmp.ne.s32.totalorder %s2382_s17, %s2378_s16 }
  0x2d   : > { %p45_p4 = scmp.eq.s32.totalorder %s2386_s18, 0  ;;  %p2167_p6 = scmp.lt.s32.totalorder %s2386_s18, 2 }
  0x2e   : > { %s2542_s13 = scalar_select %p35_p2, %s2382_s17, %s37_s27  }
  0x2f   : > { %p46_p8 = por %p45_p4, %p44_p1  ;;  %p2968_p10 = scmp.eq.s32.totalorder %s2476_s8, 1 }
  0x30   : > { %s336_s19 = sand.u32 1, %s2382_s17   ;;  %s2009_s23 = sshll.u32 %s2386_s18, 7 }
  0x31   : > { %p2546_p12 = por %p2968_p10, %p44_p1  ;;  %s2008_s26 = sshll.u32 %s336_s19, 3 }
  0x32   : > { %s2555_s11 = scalar_lea.hbm %s2945_s0, %s2009_s23  ;;  %s340_s24 = scalar_lea.vmem [#allocation3], %s2008_s26 }
  0x33   : > { %s347_s27 = sshll.u32 %s340_s24, 4  ;;  %p2557_p11 = pnand %p2167_p6, %p46_p8  ;;  %s2561_s27 = int_to_ptr.vmem [resolvable:$true] %s347_s27 }
  0x34   : > { %s337_s29 = scalar_lea.sflag [#allocation4], %s336_s19  ;;  %s2286_s30 = scalar_lea.hbm %s2555_s11, 128 }
  0x35   : > { %p2287_p13 = scmp.ne.s32.totalorder %s2555_s11, %s2286_s30  ;;  %p2288_p0 = pneg %p2557_p11 }
  0x36   : > { %s2291_s12 = scalar_lea.hbm %s2945_s0, 256  ;;  %p2292_p7 = scmp.lt.u32.totalorder %s2555_s11, %s2945_s0 }
  0x37   : > { %p2289_p3 = pnand %p2288_p0, %p2287_p13  ;;  %p2293_p9 = scmp.lt.u32.totalorder %s2291_s12, %s2286_s30 }
  0x38   : > { %p2295_p1 = scmp.lt.u32.totalorder %s2286_s30, %s2555_s11 }
  0x39   : > { %p2290_p5 = pneg %p2289_p3  ;;  %p2294_p2 = por %p2293_p9, %p2292_p7 }
  0x3b   : > { %p2296_p4 = por %p2295_p1, %p2294_p2 }
  0x3d   : > { %p2297_p6 = pnand %p2296_p4, %p2290_p5 }
  0x3f   : > { %2300 = shalt.err (!%p2297_p6)
}
  0x40   : > { %s2301_s19 = scalar_lea.vmem %s2561_s27, 128  ;;  %s2391_s24 = smov [#allocation3]  }
  0x41   : > { %p2302_p8 = scmp.ne.s32.totalorder %s2561_s27, %s2301_s19  ;;  %s2306_s21 = sshll.u32 %s2391_s24, 4  ;;  %s2307_s21 = int_to_ptr.vmem [resolvable:$false] %s2306_s21 }
  0x42   : > { %s2308_s26 = scalar_lea.vmem %s2307_s21, 256  ;;  %p2309_p3 = scmp.lt.s32.totalorder %s2561_s27, %s2307_s21 }
  0x43   : > { %p2304_p10 = pnand %p2302_p8, %p2288_p0  ;;  %p2310_p7 = scmp.lt.s32.totalorder %s2308_s26, %s2301_s19 }
  0x45   : > { %p2305_p13 = pneg %p2304_p10  ;;  %p2311_p9 = por %p2310_p7, %p2309_p3 }
  0x47   : > { %p2312_p2 = pnand %p2311_p9, %p2305_p13 }
  0x49   : > { %2315 = shalt.err (!%p2312_p2)
}
  0x4a   : > { %2161 = dma.hbm_to_vmem [thread:$0]  (!%p2557_p11), %s2555_s11, 128, %s2561_s27, %s337_s29  }
  0x4b   : > { %p2971_p5 = scmp.ne.s32.totalorder %s2965_s22, 0 }
  0x4c   : > { %s2591_s30 = sand.u32 (!%p2971_p5), 1, %s2378_s16   ;;  %p2972_p0 = scmp.ne.s32.totalorder (!%p2971_p5), %s2962_s20, 0 }
  0x4d   : > { %386 = sbr.rel (%p2971_p5) target bundleno = 1404 (0x57c), region = 56  ;;  %s2011_s12 = sshll.u32 (!%p2971_p5), %s2591_s30, 3 }
  0x4e   : > { %s389_s23 = scalar_lea.sflag (!%p2971_p5), [#allocation4], %s2591_s30  ;;  %s2597_s25 = scalar_lea.vmem (!%p2971_p5), [#allocation3], %s2011_s12 }
  0x54   : > { %2361 = dma.done.wait (%p2972_p0), %s389_s23, 128  }
  0x55   : > { %2363 = vsyncadd (%p2972_p0), %s389_s23, 4294967168  ;;  %p2973_p11 = scmp.eq.s32.totalorder %s2476_s8, 0 }
  0x57   : > { %2365 = dma.done.wait (%p2973_p11), [#allocation7], 1024   ;;  %p2974_p1 = pmov %p2973_p11 }
  0x58   : > { %s2014_s22 = sshll.u32 %s2476_s8, 3  ;;  %v645_v1 = vlaneseq  ;;  %p460_p6 = scmp.lt.s32.totalorder %s2476_s8, 1  ;;  %v2211_v5 = vld [vmem:[#allocation6] sm:$0xff]   ;;  %v2212_v6 = vld [vmem:[#allocation6 + $0x8] sm:$0xff]   ;;  %v2213_v7 = vld [vmem:[#allocation6 + $0x10] sm:$0xff]   ;;  %v2392_v60 = vmov 0  }
  0x59   : > { %2367 = vsyncadd (%p2974_p1), [#allocation7], 4294966272  ;;  %p455_p4 = scmp.lt.s32.totalorder %s2014_s22, 15  ;;  %2074 = vmatprep.subr.bf16.mxu0 %v2211_v5  ;;  %v2214_v10 = vld [vmem:[#allocation6 + $0x18] sm:$0xff]   ;;  %v2215_v19 = vld [vmem:[#allocation6 + $0x20] sm:$0xff]   ;;  %2209 = vset.pattern.permute.xlu1 %v2392_v60  ;;  %vm1068_vm0 = vcmask 1041409  }
  0x5a   : > { %v2609_v2 = vshrl.u32 %v645_v1, 7  ;;  %v1035_v3 = vand.u32 127, %v645_v1  ;;  %s461_s20 = scalar_select %p460_p6, %s2476_s8, 1  ;;  %2075 = vmatpush3.bf16.msra.mxu0 %v2211_v5  ;;  %v2216_v23 = vld [vmem:[#allocation6 + $0x28] sm:$0xff]   ;;  %v2217_v27 = vld [vmem:[#allocation6 + $0x30] sm:$0xff]   ;;  %v2218_v31 = vld [vmem:[#allocation6 + $0x38] sm:$0xff]   ;;  %2210 = vset.pattern.permute.xlu0 %v2392_v60 }
  0x5b   : > { %s2983_s22 = smov (!%p455_p4, %s2014_s22), 15  ;;  %2076 = vmatprep.subr.bf16.mxu0 %v2212_v6  ;;  %vm1070_vm1 = vcmask 1042434   ;;  %vm1072_vm2 = vcmask 1043459   ;;  %vm1074_vm3 = vcmask 1044484   ;;  %vm1076_vm4 = vcmask 1045509   ;;  %s2396_s24 = smov [#allocation8]  }
  0x5c   : > { %v2612_v4 = vsub.s32 %v1035_v3, %v2609_v2  ;;  %s2015_s11 = sshll.u32 %s2983_s22, 2  ;;  %s2615_s27 = sshll.u32 %s461_s20, 3  ;;  %v2627_v8 = vsub.s32 0, %v2609_v2  ;;  %v2630_v9 = vsub.s32 2, %v2609_v2  ;;  %v2639_v13 = vsub.s32 1, %v2609_v2 }
  0x5d   : > { %s2620_s19 = scalar_lea.vmem %s2946_s1, %s2015_s11  ;;  %s471_s26 = scalar_lea.vmem %s2949_s4, %s2615_s27  ;;  %v2660_v22 = vsub.s32 3, %v2609_v2  ;;  %v2667_v26 = vsub.s32 4, %v2609_v2  ;;  %v2680_v34 = vsub.s32 5, %v2609_v2  ;;  %v2704_v44 = vsub.s32 6, %v2609_v2 }
  0x5e   : > { %2077 = vmatpush3.bf16.msra.mxu0 %v2212_v6  ;;  %v2633_v11 = vld [vmem:[%s2620_s19] sm:$0xf]  ;;  %v2636_v12 = vld [vmem:[%s2620_s19 + $0x4] sm:$0xf]  ;;  %s467_s20 = scalar_lea.vmem %s2948_s3, %s2615_s27  ;;  %s463_s29 = scalar_lea.vmem %s2947_s2, %s2615_s27  ;;  %v2683_v35 = vld [vmem:[%s2620_s19 + $0x8] sm:$0xf] }
  0x5f   : > { %2078 = vmatprep.subr.bf16.mxu0 %v2213_v7  ;;  %v2020_v14 = vcombine.low %v2633_v11, %v2636_v12  ;;  %v2647_v15 = vld [vmem:[%s471_s26] sm:$0xff]  ;;  %v2686_v36 = vld [vmem:[%s2620_s19 + $0xc] sm:$0xf]  ;;  %v2689_v37 = vld [vmem:[%s2620_s19 + $0x10] sm:$0xf]  ;;  %v2718_v50 = vsub.s32 7, %v2609_v2  ;;  %s475_s22 = scalar_lea.vmem %s2955_s10, %s2615_s27 }
  0x60   : > { %v832_v16 = vrot.slane %v2647_v15, %v2627_v8  ;;  %v846_v17 = vrot.slane %v2647_v15, %v2630_v9  ;;  %v2653_v18 = vld [vmem:[%s467_s20] sm:$0xff]  ;;  %v839_v20 = vrot.slane %v2647_v15, %v2639_v13  ;;  %v853_v25 = vrot.slane %v2647_v15, %v2660_v22  ;;  %v2692_v38 = vld [vmem:[%s2620_s19 + $0x14] sm:$0xf]  ;;  %v2709_v46 = vld [vmem:[%s2620_s19 + $0x18] sm:$0xf]  ;;  %s2043_s27 = sshll.u32 %s2476_s8, 7 }
  0x61   : > { %2090 = vmatprep.mubr.bf16.mxu0 %v2020_v14  ;;  %v763_v21 = vrot.slane %v2653_v18, %v2627_v8  ;;  %v770_v24 = vrot.slane %v2653_v18, %v2639_v13  ;;  %v777_v28 = vrot.slane %v2653_v18, %v2630_v9  ;;  %v860_v29 = vrot.slane %v2647_v15, %v2667_v26  ;;  %v690_v30 = vld [vmem:[%s463_s29] sm:$0xff]  ;;  %v2712_v47 = vld [vmem:[%s2620_s19 + $0x1c] sm:$0xf]  ;;  %s447_s20 = scalar_lea.vmem [#allocation8], %s2011_s12  ;;  %s2900_s19 = scalar_lea.hbm %s2954_s9, %s2043_s27 }
  0x62   : > { %2079 = vmatpush3.bf16.msra.mxu0 %v2213_v7  ;;  %834 = vbcast.lane.b32.xlu0 %v832_v16, 256  ;;  %v694_v32 = vrot.slane %v690_v30, %v2627_v8  ;;  %v701_v33 = vrot.slane %v690_v30, %v2639_v13  ;;  %v784_v39 = vrot.slane %v2653_v18, %v2660_v22  ;;  %v2393_v14 = vmov 1966171168   ;;  %s1849_s11 = sshll.u32 %s447_s20, 4  ;;  %s1832_s8 = scalar_lea.sflag [#allocation5], %s2591_s30  ;;  %s2902_s11 = int_to_ptr.vmem [resolvable:$true] %s1849_s11 }
  0x63   : > { %2080 = vmatprep.subr.bf16.mxu0 %v2214_v10  ;;  %848 = vbcast.lane.b32.xlu1 %v846_v17, 256  ;;  %v867_v40 = vrot.slane %v2647_v15, %v2680_v34  ;;  %v2021_v41 = vcombine.low %v2683_v35, %v2686_v36  ;;  %v2022_v42 = vcombine.low %v2689_v37, %v2692_v38  ;;  %vm1078_vm5 = vcmask 1046534   ;;  %s2316_s12 = scalar_lea.vmem %s2902_s11, 128 }
  0x64   : > { %v708_v43 = vrot.slane %v690_v30, %v2630_v9  ;;  %v791_v45 = vrot.slane %v2653_v18, %v2667_v26  ;;  %v874_v48 = vrot.slane %v2647_v15, %v2704_v44  ;;  %v715_v49 = vrot.slane %v690_v30, %v2660_v22  ;;  %p2317_p8 = scmp.ne.s32.totalorder %s2902_s11, %s2316_s12 }
  0x65   : > { %v2023_v51 = vcombine.low %v2709_v46, %v2712_v47  ;;  %v798_v52 = vrot.slane %v2653_v18, %v2680_v34  ;;  %v881_v53 = vrot.slane %v2647_v15, %v2718_v50  ;;  %v722_v54 = vrot.slane %v690_v30, %v2667_v26 }
  0x66   : > { %2081 = vmatpush3.bf16.msra.mxu0 %v2214_v10  ;;  %841 = vbcast.lane.b32.xlu0 %v839_v20, 256  ;;  %v805_v55 = vrot.slane %v2653_v18, %v2704_v44  ;;  %v729_v56 = vrot.slane %v690_v30, %v2680_v34  ;;  %v812_v57 = vrot.slane %v2653_v18, %v2718_v50  ;;  %v643_v15 = vunpack.c.l.s4 %v2393_v14  ;;  %p2318_p10 = pnand %p2317_p8, %p2546_p12 }
  0x67   : > { %2082 = vmatprep.subr.bf16.mxu0 %v2215_v19  ;;  %765 = vbcast.lane.b32.xlu1 %v763_v21, 256  ;;  %v736_v58 = vrot.slane %v690_v30, %v2704_v44  ;;  %v743_v59 = vrot.slane %v690_v30, %v2718_v50  ;;  %v639_v21 = vld [vmem:[%s2597_s25] sm:$0xff]  ;;  %vm1080_vm6 = vcmask 1047559   ;;  %vm1083_vm7 = vcmask 64512   ;;  %s2320_s25 = sshll.u32 %s2396_s24, 4  ;;  %s2321_s25 = int_to_ptr.vmem [resolvable:$false] %s2320_s25 }
  0x68   : > { %v644_v17 = vunpack.c.0.s8 %v643_v15  ;;  %v641_v30 = vcombine.high %v639_v21, %v639_v21  ;;  %vm1371_vm8 = vcmask 1043456   ;;  %vm2395_vm9 = vmmov 0   ;;  %p2319_p13 = pneg %p2318_p10  ;;  %s2322_s21 = scalar_lea.vmem %s2321_s25, 256 }
  0x69   : > { %p2323_p3 = scmp.lt.s32.totalorder %s2902_s11, %s2321_s25  ;;  %p2324_p7 = scmp.lt.s32.totalorder %s2322_s21, %s2316_s12 }
  0x6a   : > { %2083 = vmatpush3.bf16.msra.mxu0 %v2215_v19  ;;  %772 = vbcast.lane.b32.xlu0 %v770_v24, 256  ;;  %v647_v20 = vsub.s32 %v644_v17, %v2609_v2 }
  0x6b   : > { %2084 = vmatprep.subr.bf16.mxu0 %v2216_v23  ;;  %855 = vbcast.lane.b32.xlu1 %v853_v25, 256  ;;  %p2325_p9 = por %p2324_p7, %p2323_p3 }
  0x6c   : > { %v648_v24 = vrot.slane %v639_v21, %v647_v20 }
  0x6d   : > { %p2326_p2 = pnand %p2325_p9, %p2319_p13 }
  0x6e   : > { %2085 = vmatpush3.bf16.msra.mxu0 %v2216_v23  ;;  %779 = vbcast.lane.b32.xlu0 %v777_v28, 256  ;;  %v638_v28 = vld [vmem:[%s2951_s6] sm:$0x7] }
  0x6f   : > { %2086 = vmatprep.subr.bf16.mxu0 %v2217_v27  ;;  %862 = vbcast.lane.b32.xlu1 %v860_v29, 256  ;;  %v664_v29 = vrot.slane %v648_v24, %v647_v20 }
  0x72   : > { %2087 = vmatpush3.bf16.msra.mxu0 %v2217_v27  ;;  %696 = vbcast.lane.b32.xlu0 %v694_v32, 256  ;;  %v656_v27 = vcombine.high %v648_v24, %v648_v24  ;;  %v686_v32 = vcombine.high %v664_v29, %v664_v29 }
  0x73   : > { %2088 = vmatprep.subr.bf16.mxu0 %v2218_v31  ;;  %703 = vbcast.lane.b32.xlu1 %v701_v33, 256 }
  0x74   : > { %v678_v33 = vrot.slane %v656_v27, %v647_v20 }
  0x76   : > { %2089 = vmatpush3.bf16.msra.mxu0 %v2218_v31  ;;  %786 = vbcast.lane.b32.xlu0 %v784_v39, 256  ;;  %v888_v39 = vrot.slane %v638_v28, %v2630_v9 }
  0x77   : > { %869 = vbcast.lane.b32.xlu1 %v867_v40, 256 }
  0x79   : > { %2091 = vmatmul.mubr.bf16.vlgmr.msra.gmra.mrb[0].mxu0 %v2021_v41  ;;  %v688_v41 = vcombine.high %v678_v33, %v678_v33 }
  0x7a   : > { %2094 = vmatprep.mubr.bf16.mxu0 %v2022_v42  ;;  %710 = vbcast.lane.b32.xlu0 %v708_v43, 256  ;;  %v655_v42 = vrot.slane %v641_v30, %v647_v20 }
  0x7b   : > { %793 = vbcast.lane.b32.xlu1 %v791_v45, 256  ;;  %v908_v45 = vrot.slane %v686_v32, %v2627_v8 }
  0x7e   : > { %876 = vbcast.lane.b32.xlu0 %v874_v48, 256  ;;  %v657_v48 = vcombine.high %v655_v42, %v655_v42 }
  0x7f   : > { %717 = vbcast.lane.b32.xlu1 %v715_v49, 256 }
  0x80   : > { %v685_v14 = vrot.slane %v657_v48, %v647_v20 }
  0x81   : > { %2095 = vmatmul.mubr.bf16.gmra.mrb[4].mxu0 %v2023_v51  ;;  %v900_v51 = vrot.slane %v664_v29, %v2627_v8 }
  0x82   : > { %800 = vbcast.lane.b32.xlu0 %v798_v52, 256  ;;  %v819_v52 = vrot.slane %v638_v28, %v2639_v13  ;;  %v689_v29 = vcombine.high %v685_v14, %v685_v14 }
  0x83   : > { %883 = vbcast.lane.b32.xlu1 %v881_v53, 256 }
  0x86   : > { %724 = vbcast.lane.b32.xlu0 %v722_v54, 256  ;;  %v912_v54 = vrot.slane %v688_v41, %v2627_v8 }
  0x87   : > { %807 = vbcast.lane.b32.xlu1 %v805_v55, 256  ;;  %v671_v55 = vrot.slane %v655_v42, %v647_v20 }
  0x89   : > { %v916_v20 = vrot.slane %v671_v55, %v2627_v8 }
  0x8a   : > { %731 = vbcast.lane.b32.xlu0 %v729_v56, 256 }
  0x8b   : > { %814 = vbcast.lane.b32.xlu1 %v812_v57, 256  ;;  %v904_v57 = vrot.slane %v678_v33, %v2627_v8 }
  0x8e   : > { %738 = vbcast.lane.b32.xlu0 %v736_v58, 256 }
  0x8f   : > { %745 = vbcast.lane.b32.xlu1 %v743_v59, 256 }
  0xd4   : > { %v835_v61 = vpop.permute.xlu0 %834 }
  0xd5   : > { %v849_v62 = vpop.permute.xlu1 %848  ;;  %v889_v49 = vmul.f32 %v888_v39, %v835_v61  ;;  %v750_v61 = vrot.slane %v638_v28, %v2627_v8 }
  0xd6   : > { %v891_v43 = vmul.f32 %v888_v39, %v849_v62  ;;  %v687_v62 = vcombine.high %v671_v55, %v671_v55 }
  0xd7   : > { %v937_v15 = vadd.f32 %v900_v51, %v889_v49 }
  0xd8   : > { %v842_v63 = vpop.permute.xlu0 %841  ;;  %v939_v59 = vadd.f32 %v908_v45, %v891_v43  ;;  %v924_v33 = vrot.slane %v687_v62, %v2627_v8 }
  0xd9   : > { %v766_v0 = vpop.permute.xlu1 %765  ;;  %v890_v56 = vmul.f32 %v888_v39, %v842_v63 }
  0xda   : > { %v820_v17 = vmul.f32 %v819_v52, %v766_v0 }
  0xdc   : > { %v773_v1 = vpop.permute.xlu0 %772  ;;  %v945_v43 = vadd.f32 %v937_v15, %v820_v17 }
  0xdd   : > { %v856_v3 = vpop.permute.xlu1 %855  ;;  %v821_v30 = vmul.f32 %v819_v52, %v773_v1 }
  0xde   : > { %v892_v53 = vmul.f32 %v888_v39, %v856_v3  ;;  %v938_v3 = vadd.f32 %v904_v57, %v890_v56 }
  0xe0   : > { %v780_v5 = vpop.permute.xlu0 %779  ;;  %v940_v24 = vadd.f32 %v912_v54, %v892_v53  ;;  %v946_v51 = vadd.f32 %v938_v3, %v821_v30 }
  0xe1   : > { %v863_v6 = vpop.permute.xlu1 %862  ;;  %v822_v60 = vmul.f32 %v819_v52, %v780_v5 }
  0xe2   : > { %v893_v5 = vmul.f32 %v888_v39, %v863_v6 }
  0xe3   : > { %v947_v41 = vadd.f32 %v939_v59, %v822_v60 }
  0xe4   : > { %v697_v7 = vpop.permute.xlu0 %696  ;;  %v941_v57 = vadd.f32 %v916_v20, %v893_v5 }
  0xe5   : > { %v2734_v10 = vpop.permute.xlu1 %703  ;;  %v751_v45 = vmul.f32 %v750_v61, %v697_v7 }
  0xe6   : > { %v752_v1 = vmul.f32 %v750_v61, %v2734_v10 }
  0xe7   : > { %v953_v7 = vadd.f32 %v945_v43, %v751_v45 }
  0xe8   : > { %v787_v16 = vpop.permute.xlu0 %786 }
  0xe9   : > { %v870_v18 = vpop.permute.xlu1 %869  ;;  %v823_v27 = vmul.f32 %v819_v52, %v787_v16  ;;  %v928_v16 = vrot.slane %v689_v29, %v2627_v8 }
  0xea   : > { %v894_v53 = vmul.f32 %v888_v39, %v870_v18 }
  0xeb   : > { %v948_v48 = vadd.f32 %v940_v24, %v823_v27 }
  0xec   : > { %v711_v19 = vpop.permute.xlu0 %710 }
  0xed   : > { %v794_v23 = vpop.permute.xlu1 %793  ;;  %v753_v63 = vmul.f32 %v750_v61, %v711_v19  ;;  %v920_v19 = vrot.slane %v685_v14, %v2627_v8 }
  0xee   : > { %v824_v6 = vmul.f32 %v819_v52, %v794_v23 }
  0xef   : > { %v955_v56 = vadd.f32 %v947_v41, %v753_v63  ;;  %v942_v17 = vadd.f32 %v920_v19, %v894_v53 }
  0xf0   : > { %v877_v25 = vpop.permute.xlu0 %876  ;;  %v949_v23 = vadd.f32 %v941_v57, %v824_v6 }
  0xf1   : > { %v718_v31 = vpop.permute.xlu1 %717  ;;  %v895_v42 = vmul.f32 %v888_v39, %v877_v25 }
  0xf2   : > { %v754_v28 = vmul.f32 %v750_v61, %v718_v31 }
  0xf3   : > { %v943_v25 = vadd.f32 %v924_v33, %v895_v42 }
  0xf4   : > { %v801_v40 = vpop.permute.xlu0 %800  ;;  %v956_v15 = vadd.f32 %v948_v48, %v754_v28 }
  0xf5   : > { %v884_v2 = vpop.permute.xlu1 %883  ;;  %v825_v24 = vmul.f32 %v819_v52, %v801_v40 }
  0xf6   : > { %v896_v49 = vmul.f32 %v888_v39, %v884_v2  ;;  %v954_v39 = vadd.f32 %v946_v51, %v752_v1  ;;  %v2032_v51 = vld [vmem:[%s2952_s7] ss:$0 sm:$0xff] }
  0xf7   : > { %v950_v33 = vadd.f32 %v942_v17, %v825_v24 }
  0xf8   : > { %v725_v58 = vpop.permute.xlu0 %724  ;;  %v944_v60 = vadd.f32 %v928_v16, %v896_v49 }
  0xf9   : > { %v808_v21 = vpop.permute.xlu1 %807  ;;  %v755_v30 = vmul.f32 %v750_v61, %v725_v58 }
  0xfa   : > { %v826_v54 = vmul.f32 %v819_v52, %v808_v21 }
  0xfc   : > { %v732_v32 = vpop.permute.xlu0 %731  ;;  %v951_v14 = vadd.f32 %v943_v25, %v826_v54 }
  0xfd   : > { %v815_v0 = vpop.permute.xlu1 %814  ;;  %v756_v43 = vmul.f32 %v750_v61, %v732_v32 }
  0xfe   : > { %v827_v62 = vmul.f32 %v819_v52, %v815_v0  ;;  %v957_v52 = vadd.f32 %v949_v23, %v755_v30 }
  0xff   : > { %v958_v49 = vadd.f32 %v950_v33, %v756_v43 }
 0x100   : > { %v739_v59 = vpop.permute.xlu0 %738  ;;  %v952_v63 = vadd.f32 %v944_v60, %v827_v62 }
 0x101   : > { %v746_v10 = vpop.permute.xlu1 %745  ;;  %v757_v29 = vmul.f32 %v750_v61, %v739_v59 }
 0x102   : > { %v758_v42 = vmul.f32 %v750_v61, %v746_v10 }
 0x103   : > { %v959_v5 = vadd.f32 %v951_v14, %v757_v29 }
 0x104   : > { %v960_v0 = vadd.f32 %v952_v63, %v758_v42 }
 0x14c   : > { %v2092_v55 = vpop.f32.mrb[0].mxu0 }
 0x14d   : > { %v963_v31 = vadd.f32 %v2092_v55, %v955_v56  ;;  %v607_v2 = vpop.f32.mrb[1].mxu0 }
 0x14e   : > { %v961_v27 = vadd.f32 %v953_v7, %v607_v2  ;;  %v2093_v18 = vpop.f32.mrb[2].mxu0 }
 0x14f   : > { %2224 = vtanh.f32 %v963_v31  ;;  %v964_v21 = vadd.f32 %v2093_v18, %v956_v15  ;;  %v610_v3 = vpop.f32.mrb[3].mxu0  ;;  %v2033_v15 = vld [vmem:[#allocation2] ss:$0 sm:$0xff] }
 0x150   : > { %v962_v41 = vadd.f32 %v954_v39, %v610_v3  ;;  %2226 = vtanh.f32 %v961_v27 }
 0x152   : > { %2228 = vtanh.f32 %v962_v41 }
 0x153   : > { %2230 = vtanh.f32 %v964_v21 }
 0x154   : > { %v2096_v40 = vpop.f32.mrb[4].mxu0 }
 0x155   : > { %v967_v20 = vadd.f32 %v2096_v40, %v959_v5  ;;  %v623_v45 = vpop.f32.mrb[5].mxu0 }
 0x156   : > { %v965_v48 = vadd.f32 %v957_v52, %v623_v45  ;;  %v2097_v28 = vpop.f32.mrb[6].mxu0 }
 0x157   : > { %2232 = vtanh.f32 %v967_v20  ;;  %v968_v16 = vadd.f32 %v2097_v28, %v960_v0  ;;  %v626_v58 = vpop.f32.mrb[7].mxu0 }
 0x158   : > { %v966_v1 = vadd.f32 %v958_v49, %v626_v58  ;;  %2234 = vtanh.f32 %v965_v48 }
 0x159   : > { %v2225_v61 = vpop.eup %2224 }
 0x15a   : > { %2236 = vtanh.f32 %v966_v1  ;;  %v986_v32 = vmul.f32 %v2225_v61, %v2032_v51  ;;  %v2227_v53 = vpop.eup %2226 }
 0x15b   : > { %2238 = vtanh.f32 %v968_v16  ;;  %v984_v54 = vmul.f32 %v2227_v53, %v2032_v51 }
 0x15c   : > { %v2229_v19 = vpop.eup %2228  ;;  %996 = vadd.xlane.f32.xlu0 %v986_v32 }
 0x15d   : > { %v985_v25 = vmul.f32 %v2229_v19, %v2032_v51  ;;  %v2231_v56 = vpop.eup %2230 }
 0x15e   : > { %v987_v6 = vmul.f32 %v2231_v56, %v2032_v51 }
 0x15f   : > { %994 = vadd.xlane.f32.xlu1 %v985_v25 }
 0x160   : > { %992 = vadd.xlane.f32.xlu0 %v984_v54 }
 0x161   : > { %v2233_v57 = vpop.eup %2232 }
 0x162   : > { %v990_v59 = vmul.f32 %v2233_v57, %v2032_v51  ;;  %v2235_v55 = vpop.eup %2234 }
 0x163   : > { %v988_v62 = vmul.f32 %v2235_v55, %v2032_v51 }
 0x164   : > { %v2237_v7 = vpop.eup %2236  ;;  %998 = vadd.xlane.f32.xlu0 %v987_v6  ;;  %1004 = vadd.xlane.f32.xlu1 %v990_v59 }
 0x165   : > { %v989_v60 = vmul.f32 %v2237_v7, %v2032_v51  ;;  %v2239_v31 = vpop.eup %2238 }
 0x166   : > { %v991_v2 = vmul.f32 %v2239_v31, %v2032_v51 }
 0x168   : > { %1000 = vadd.xlane.f32.xlu1 %v988_v62  ;;  %1002 = vadd.xlane.f32.xlu0 %v989_v60 }
 0x16c   : > { %1006 = vadd.xlane.f32.xlu0 %v991_v2 }
 0x179   : > { %1015 = vperm.xlu1 %2209, %v2033_v15  }
 0x1e9   : > { %v997_v17 = vpop.xlane.xlu0 %996 }
 0x1ec   : > { %v995_v24 = vpop.xlane.xlu1 %994 }
 0x1ed   : > { %v993_v27 = vpop.xlane.xlu0 %992 }
 0x1f1   : > { %v999_v10 = vpop.xlane.xlu0 %998  ;;  %v1005_v18 = vpop.xlane.xlu1 %1004 }
 0x1f5   : > { %v1001_v39 = vpop.xlane.xlu1 %1000  ;;  %v1003_v14 = vpop.xlane.xlu0 %1002 }
 0x1f9   : > { %v1016_v29 = vpop.permute.xlu1 %1015  ;;  %v1007_v30 = vpop.xlane.xlu0 %1006 }
 0x1fa   : > { %v1018_v21 = vadd.f32 %v1016_v29, %v993_v27  ;;  %v1019_v3 = vadd.f32 %v1016_v29, %v995_v24  ;;  %v1020_v23 = vadd.f32 %v1016_v29, %v997_v17  ;;  %v1021_v41 = vadd.f32 %v1016_v29, %v999_v10 }
 0x1fb   : > { %v1022_v63 = vadd.f32 %v1016_v29, %v1001_v39  ;;  %v1023_v42 = vadd.f32 %v1016_v29, %v1003_v14  ;;  %v1024_v40 = vadd.f32 %v1016_v29, %v1005_v18  ;;  %v1025_v52 = vadd.f32 %v1016_v29, %v1007_v30 }
 0x1fc   : > { %v1039_v33 = vrot.slane %v1018_v21, %v2612_v4  ;;  %v1043_v43 = vrot.slane %v1019_v3, %v2612_v4  ;;  %v1047_v5 = vrot.slane %v1020_v23, %v2612_v4  ;;  %v1051_v20 = vrot.slane %v1021_v41, %v2612_v4 }
 0x1fd   : > { %v1055_v0 = vrot.slane %v1022_v63, %v2612_v4  ;;  %v1059_v28 = vrot.slane %v1023_v42, %v2612_v4  ;;  %v1063_v16 = vrot.slane %v1024_v40, %v2612_v4  ;;  %v1067_v51 = vrot.slane %v1025_v52, %v2612_v4 }
 0x1fe   : > { %v1069_v45 = vsel %vm1068_vm0, %v1043_v43, %v1039_v33 }
 0x1ff   : > { %v1071_v48 = vsel %vm1070_vm1, %v1047_v5, %v1069_v45 }
 0x200   : > { %v1073_v49 = vsel %vm1072_vm2, %v1051_v20, %v1071_v48 }
 0x201   : > { %v1075_v58 = vsel %vm1074_vm3, %v1055_v0, %v1073_v49 }
 0x202   : > { %v1077_v1 = vsel %vm1076_vm4, %v1059_v28, %v1075_v58 }
 0x203   : > { %v1079_v61 = vsel %vm1078_vm5, %v1063_v16, %v1077_v1 }
 0x204   : > { %v1081_v32 = vsel %vm1080_vm6, %v1067_v51, %v1079_v61 }
 0x205   : > { %v1084_v53 = vsel %vm1083_vm7, %v1081_v32, -inf }
 0x206   : > { %1085 = vmax.xlane.f32.xlu0 %v1084_v53 }
 0x293   : > { %v1086_v19 = vpop.xlane.xlu0 %1085 }
 0x294   : > { %v1091_v25 = vrot.slane %v1086_v19, %v2627_v8  ;;  %v1095_v54 = vrot.slane %v1086_v19, %v2639_v13  ;;  %v1099_v56 = vrot.slane %v1086_v19, %v2630_v9  ;;  %v1103_v59 = vrot.slane %v1086_v19, %v2660_v22 }
 0x295   : > { %v1107_v62 = vrot.slane %v1086_v19, %v2667_v26  ;;  %v1111_v15 = vrot.slane %v1086_v19, %v2680_v34  ;;  %v1115_v27 = vrot.slane %v1086_v19, %v2704_v44  ;;  %v1119_v29 = vrot.slane %v1086_v19, %v2718_v50 }
 0x296   : > { %v1128_v57 = vsub.f32 %v1018_v21, %v1091_v25  ;;  %v1129_v6 = vsub.f32 %v1019_v3, %v1095_v54  ;;  %v1130_v55 = vsub.f32 %v1020_v23, %v1099_v56  ;;  %v1131_v31 = vsub.f32 %v1021_v41, %v1103_v59 }
 0x297   : > { %v1132_v17 = vsub.f32 %v1022_v63, %v1107_v62  ;;  %v1133_v10 = vsub.f32 %v1023_v42, %v1111_v15  ;;  %v1134_v21 = vsub.f32 %v1024_v40, %v1115_v27  ;;  %v1135_v30 = vsub.f32 %v1025_v52, %v1119_v29 }
 0x298   : > { %v1136_v7 = vmul.f32 1.442695, %v1128_v57  ;;  %v1138_v60 = vmul.f32 1.442695, %v1129_v6  ;;  %v1140_v2 = vmul.f32 1.442695, %v1130_v55 }
 0x299   : > { %v1142_v24 = vmul.f32 1.442695, %v1131_v31  ;;  %v1144_v18 = vmul.f32 1.442695, %v1132_v17  ;;  %v1146_v3 = vmul.f32 1.442695, %v1133_v10 }
 0x29a   : > { %2240 = vpow2.f32 %v1136_v7  ;;  %v1148_v41 = vmul.f32 1.442695, %v1134_v21  ;;  %v1150_v42 = vmul.f32 1.442695, %v1135_v30 }
 0x29b   : > { %2242 = vpow2.f32 %v1138_v60 }
 0x29c   : > { %2244 = vpow2.f32 %v1140_v2 }
 0x29d   : > { %2246 = vpow2.f32 %v1142_v24 }
 0x29e   : > { %2248 = vpow2.f32 %v1144_v18 }
 0x29f   : > { %2250 = vpow2.f32 %v1146_v3 }
 0x2a0   : > { %2252 = vpow2.f32 %v1148_v41 }
 0x2a1   : > { %2254 = vpow2.f32 %v1150_v42 }
 0x2a4   : > { %v2241_v39 = vpop.eup %2240 }
 0x2a5   : > { %v2243_v14 = vpop.eup %2242  ;;  %1161 = vperm.xlu0 %2210, %v2241_v39  }
 0x2a6   : > { %1164 = vperm.xlu1 %2209, %v2243_v14   ;;  %v2245_v23 = vpop.eup %2244 }
 0x2a7   : > { %v2247_v63 = vpop.eup %2246 }
 0x2a8   : > { %v2780_v33 = vpop.eup %2248 }
 0x2a9   : > { %v2251_v43 = vpop.eup %2250 }
 0x2aa   : > { %1167 = vperm.xlu1 %2209, %v2245_v23   ;;  %v2783_v5 = vpop.eup %2252 }
 0x2ab   : > { %v2255_v40 = vpop.eup %2254 }
 0x2ae   : > { %1170 = vperm.xlu1 %2209, %v2247_v63  }
 0x2b2   : > { %1173 = vperm.xlu1 %2209, %v2780_v33  }
 0x2b6   : > { %1176 = vperm.xlu1 %2209, %v2251_v43  }
 0x2ba   : > { %1179 = vperm.xlu1 %2209, %v2783_v5  }
 0x2be   : > { %1182 = vperm.xlu1 %2209, %v2255_v40  }
 0x324   : > { %v1162_v48 = vpop.permute.xlu0 %1161 }
 0x325   : > { %v1165_v52 = vpop.permute.xlu1 %1164  ;;  %v1187_v16 = vrot.slane %v1162_v48, %v2612_v4 }
 0x326   : > { %v1191_v49 = vrot.slane %v1165_v52, %v2612_v4 }
 0x328   : > { %v1216_v32 = vsel %vm1068_vm0, %v1191_v49, %v1187_v16  ;;  %v1429_v16 = vsel %vm1371_vm8, %v2636_v12, 0 }
 0x329   : > { %v1168_v20 = vpop.permute.xlu1 %1167 }
 0x32a   : > { %v1195_v58 = vrot.slane %v1168_v20, %v2612_v4 }
 0x32c   : > { %v1217_v19 = vsel %vm1070_vm1, %v1195_v58, %v1216_v32  ;;  %v1485_v32 = vsel %vm1371_vm8, %v2683_v35, 0 }
 0x32d   : > { %v1171_v45 = vpop.permute.xlu1 %1170 }
 0x32e   : > { %v1199_v51 = vrot.slane %v1171_v45, %v2612_v4 }
 0x330   : > { %v1218_v54 = vsel %vm1072_vm2, %v1199_v51, %v1217_v19 }
 0x331   : > { %v1174_v0 = vpop.permute.xlu1 %1173 }
 0x332   : > { %v1203_v1 = vrot.slane %v1174_v0, %v2612_v4 }
 0x334   : > { %v1219_v56 = vsel %vm1074_vm3, %v1203_v1, %v1218_v54  ;;  %v1541_v54 = vsel %vm1371_vm8, %v2686_v36, 0 }
 0x335   : > { %v1177_v28 = vpop.permute.xlu1 %1176 }
 0x336   : > { %v1207_v53 = vrot.slane %v1177_v28, %v2612_v4 }
 0x338   : > { %v1220_v6 = vsel %vm1076_vm4, %v1207_v53, %v1219_v56 }
 0x339   : > { %v1180_v61 = vpop.permute.xlu1 %1179 }
 0x33a   : > { %v1211_v25 = vrot.slane %v1180_v61, %v2612_v4 }
 0x33c   : > { %v1221_v55 = vsel %vm1078_vm5, %v1211_v25, %v1220_v6 }
 0x33d   : > { %v1183_v57 = vpop.permute.xlu1 %1182 }
 0x33e   : > { %v1215_v59 = vrot.slane %v1183_v57, %v2612_v4 }
 0x340   : > { %v1222_v7 = vsel %vm1080_vm6, %v1215_v59, %v1221_v55 }
 0x341   : > { %v1224_v60 = vsel %vm1083_vm7, %v1222_v7, 0.0  ;;  %v1597_v7 = vsel %vm1371_vm8, %v2689_v37, 0 }
 0x342   : > { %1225 = vadd.xlane.f32.xlu1 %v1224_v60 }
 0x3cf   : > { %v1226_v62 = vpop.xlane.xlu1 %1225 }
 0x3d0   : > { %2256 = vrcp.f32 %v1226_v62 }
 0x3da   : > { %v2257_v31 = vpop.eup %2256 }
 0x3db   : > { %v1232_v2 = vrot.slane %v2257_v31, %v2627_v8  ;;  %v1236_v15 = vrot.slane %v2257_v31, %v2639_v13  ;;  %v1252_v24 = vrot.slane %v2257_v31, %v2680_v34  ;;  %v1240_v10 = vrot.slane %v2257_v31, %v2630_v9 }
 0x3dc   : > { %v1260_v29 = vrot.slane %v2257_v31, %v2718_v50  ;;  %v1244_v21 = vrot.slane %v2257_v31, %v2660_v22  ;;  %v1248_v34 = vrot.slane %v2257_v31, %v2667_v26  ;;  %v1373_v22 = vsel %vm1371_vm8, %v2633_v11, 0 }
 0x3dd   : > { %v1269_v17 = vmul.f32 %v2241_v39, %v1232_v2  ;;  %v1270_v27 = vmul.f32 %v2243_v14, %v1236_v15  ;;  %v1274_v3 = vmul.f32 %v2251_v43, %v1252_v24  ;;  %v1271_v42 = vmul.f32 %v2245_v23, %v1240_v10 }
 0x3de   : > { %v1276_v8 = vmul.f32 %v2255_v40, %v1260_v29  ;;  %v1272_v13 = vmul.f32 %v2247_v63, %v1244_v21  ;;  %v2394_v39 = vmov 0.0   ;;  %v1273_v23 = vmul.f32 %v2780_v33, %v1248_v34 }
 0x3df   : > { %1286 = vperm.xlu1 %2209, %v1269_v17   ;;  %v1350_v18 = vpack.c.bf16 %v1269_v17, %v1269_v17  ;;  %v1351_v41 = vpack.c.bf16 %v1270_v27, %v1270_v27  ;;  %2098 = vmatprep.subr.bf16.mxu1 %v2394_v39  ;;  %v1352_v50 = vpack.c.bf16 %v1271_v42, %v1271_v42  ;;  %v1709_v33 = vsel %vm1371_vm8, %v2709_v46, 0 }
 0x3e0   : > { %2134 = vmatprep.subr.bf16.mxu0 %v2394_v39  ;;  %2099 = vmatpush3.bf16.msra.mxu1 %v1373_v22  ;;  %v1353_v14 = vpack.c.bf16 %v1272_v13, %v1272_v13  ;;  %v1354_v43 = vpack.c.bf16 %v1273_v23, %v1273_v23  ;;  %v1256_v11 = vrot.slane %v2257_v31, %v2704_v44  ;;  %v1653_v15 = vsel %vm1371_vm8, %v2692_v38, 0 }
 0x3e1   : > { %v1359_v30 = vunpack.c.l.b16 %v1350_v18  ;;  %v1416_v9 = vunpack.c.l.b16 %v1351_v41  ;;  %2100 = vmatprep.mubr.msk.bf16.mxu1 %vm2395_vm9, %v2394_v39  ;;  %2104 = vmatprep.subr.bf16.mxu1 %v2394_v39  ;;  %v1472_v26 = vunpack.c.l.b16 %v1352_v50  ;;  %v1355_v52 = vpack.c.bf16 %v1274_v3, %v1274_v3 }
 0x3e2   : > { %2136 = vmatprep.mubr.msk.bf16.mxu0 %vm2395_vm9, %v2394_v39  ;;  %v1528_v63 = vunpack.c.l.b16 %v1353_v14  ;;  %v1584_v40 = vunpack.c.l.b16 %v1354_v43  ;;  %v1275_v20 = vmul.f32 %v2783_v5, %v1256_v11  ;;  %v1357_v28 = vpack.c.bf16 %v1276_v8, %v1276_v8  ;;  %2135 = vmatpush3.bf16.msra.mxu0 %v1709_v33 }
 0x3e3   : > { %1301 = vperm.xlu1 %2209, %v1274_v3   ;;  %1361 = vperm.xlu0 %2210, %v1359_v30   ;;  %v1640_v45 = vunpack.c.l.b16 %v1355_v52  ;;  %v1765_v3 = vsel %vm1371_vm8, %v2712_v47, 0 }
 0x3e4   : > { %v1356_v0 = vpack.c.bf16 %v1275_v20, %v1275_v20  ;;  %v1752_v49 = vunpack.c.l.b16 %v1357_v28 }
 0x3e6   : > { %v1696_v48 = vunpack.c.l.b16 %v1356_v0 }
 0x3e7   : > { %1307 = vperm.xlu1 %2209, %v1276_v8   ;;  %1418 = vperm.xlu0 %2210, %v1416_v9  }
 0x3eb   : > { %1474 = vperm.xlu0 %2210, %v1472_v26  }
 0x3ef   : > { %1530 = vperm.xlu0 %2210, %v1528_v63  }
 0x3f3   : > { %1586 = vperm.xlu0 %2210, %v1584_v40  }
 0x3f7   : > { %1642 = vperm.xlu0 %2210, %v1640_v45  }
 0x3fb   : > { %1698 = vperm.xlu0 %2210, %v1696_v48  }
 0x3ff   : > { %1754 = vperm.xlu0 %2210, %v1752_v49  }
 0x403   : > { %1289 = vperm.xlu0 %2210, %v1270_v27  }
 0x407   : > { %1292 = vperm.xlu0 %2210, %v1271_v42  }
 0x40b   : > { %1295 = vperm.xlu0 %2210, %v1272_v13  }
 0x40f   : > { %1298 = vperm.xlu0 %2210, %v1273_v23  }
 0x413   : > { %1304 = vperm.xlu0 %2210, %v1275_v20  }
 0x45e   : > { %v1287_v31 = vpop.permute.xlu1 %1286 }
 0x45f   : > { %v1312_v29 = vrot.slane %v1287_v31, %v2612_v4 }
 0x462   : > { %v1362_v44 = vpop.permute.xlu0 %1361  ;;  %v1302_v10 = vpop.permute.xlu1 %1301 }
 0x463   : > { %v1366_v5 = vrot.slane %v1362_v44, %v2612_v4  ;;  %v1332_v50 = vrot.slane %v1302_v10, %v2612_v4 }
 0x465   : > { %v1367_v58 = vpack.c.b16 %v1366_v5, %v1366_v5 }
 0x466   : > { %v1419_v51 = vpop.permute.xlu0 %1418  ;;  %v1308_v34 = vpop.permute.xlu1 %1307 }
 0x467   : > { %2101 = vmatmul.mubr.msk.bf16.vlgmr.msra.gmra.mrb[0].mxu1 %vm1083_vm7, %v1367_v58  ;;  %v1423_v46 = vrot.slane %v1419_v51, %v2612_v4  ;;  %v1340_v14 = vrot.slane %v1308_v34, %v2612_v4 }
 0x468   : > { %2105 = vmatpush3.bf16.msra.mxu1 %v1429_v16  ;;  %2106 = vmatprep.mubr.msk.bf16.mxu1 %vm2395_vm9, %v2394_v39 }
 0x469   : > { %2110 = vmatprep.subr.bf16.mxu1 %v2394_v39  ;;  %v1424_v61 = vpack.c.b16 %v1423_v46, %v1423_v46 }
 0x46a   : > { %v1475_v1 = vpop.permute.xlu0 %1474 }
 0x46b   : > { %v1479_v12 = vrot.slane %v1475_v1, %v2612_v4 }
 0x46d   : > { %v1480_v25 = vpack.c.b16 %v1479_v12, %v1479_v12 }
 0x46e   : > { %v1531_v53 = vpop.permute.xlu0 %1530 }
 0x46f   : > { %2107 = vmatmul.mubr.msk.bf16.vlgmr.msra.gmra.mrb[4].mxu1 %vm1083_vm7, %v1424_v61  ;;  %v1535_v35 = vrot.slane %v1531_v53, %v2612_v4 }
 0x470   : > { %2111 = vmatpush3.bf16.msra.mxu1 %v1485_v32  ;;  %2112 = vmatprep.mubr.msk.bf16.mxu1 %vm2395_vm9, %v2394_v39 }
 0x471   : > { %2116 = vmatprep.subr.bf16.mxu1 %v2394_v39  ;;  %v1536_v59 = vpack.c.b16 %v1535_v35, %v1535_v35 }
 0x472   : > { %v1587_v19 = vpop.permute.xlu0 %1586 }
 0x473   : > { %v1591_v60 = vrot.slane %v1587_v19, %v2612_v4 }
 0x475   : > { %v1592_v2 = vpack.c.b16 %v1591_v60, %v1591_v60 }
 0x476   : > { %v1643_v56 = vpop.permute.xlu0 %1642 }
 0x477   : > { %2113 = vmatmul.mubr.msk.bf16.vlgmr.msra.gmra.mrb[8].mxu1 %vm1083_vm7, %v1480_v25  ;;  %v1647_v17 = vrot.slane %v1643_v56, %v2612_v4 }
 0x478   : > { %2117 = vmatpush3.bf16.msra.mxu1 %v1541_v54  ;;  %2118 = vmatprep.mubr.msk.bf16.mxu1 %vm2395_vm9, %v2394_v39 }
 0x479   : > { %2122 = vmatprep.subr.bf16.mxu1 %v2394_v39  ;;  %v1648_v21 = vpack.c.b16 %v1647_v17, %v1647_v17 }
 0x47a   : > { %v1699_v57 = vpop.permute.xlu0 %1698 }
 0x47b   : > { %v1703_v6 = vrot.slane %v1699_v57, %v2612_v4 }
 0x47d   : > { %v1704_v55 = vpack.c.b16 %v1703_v6, %v1703_v6 }
 0x47e   : > { %v1755_v36 = vpop.permute.xlu0 %1754 }
 0x47f   : > { %2119 = vmatmul.mubr.msk.bf16.vlgmr.msra.gmra.mrb[12].mxu1 %vm1083_vm7, %v1536_v59  ;;  %2137 = vmatmul.mubr.msk.bf16.vlgmr.msra.gmra.mrb[8].mxu0 %vm1083_vm7, %v1704_v55  ;;  %v1759_v9 = vrot.slane %v1755_v36, %v2612_v4 }
 0x480   : > { %2123 = vmatpush3.bf16.msra.mxu1 %v1597_v7  ;;  %2124 = vmatprep.mubr.msk.bf16.mxu1 %vm2395_vm9, %v2394_v39 }
 0x481   : > { %2128 = vmatprep.subr.bf16.mxu1 %v2394_v39  ;;  %v1760_v63 = vpack.c.b16 %v1759_v9, %v1759_v9 }
 0x482   : > { %v1290_v62 = vpop.permute.xlu0 %1289 }
 0x483   : > { %v1316_v24 = vrot.slane %v1290_v62, %v2612_v4 }
 0x485   : > { %v1341_v30 = vsel %vm1068_vm0, %v1316_v24, %v1312_v29 }
 0x486   : > { %v1293_v37 = vpop.permute.xlu0 %1292 }
 0x487   : > { %2125 = vmatmul.mubr.msk.bf16.vlgmr.msra.gmra.mrb[16].mxu1 %vm1083_vm7, %v1592_v2  ;;  %v1320_v18 = vrot.slane %v1293_v37, %v2612_v4 }
 0x488   : > { %2129 = vmatpush3.bf16.msra.mxu1 %v1653_v15  ;;  %2130 = vmatprep.mubr.msk.bf16.mxu1 %vm2395_vm9, %v2394_v39 }
 0x489   : > { %2140 = vmatprep.subr.bf16.mxu1 %v2394_v39  ;;  %v1342_v42 = vsel %vm1070_vm1, %v1320_v18, %v1341_v30 }
 0x48a   : > { %v1296_v27 = vpop.permute.xlu0 %1295 }
 0x48b   : > { %v1324_v38 = vrot.slane %v1296_v27, %v2612_v4 }
 0x48d   : > { %v1343_v13 = vsel %vm1072_vm2, %v1324_v38, %v1342_v42 }
 0x48e   : > { %v1299_v41 = vpop.permute.xlu0 %1298 }
 0x48f   : > { %v1328_v8 = vrot.slane %v1299_v41, %v2612_v4  ;;  %2131 = vmatmul.mubr.msk.bf16.vlgmr.msra.gmra.mrb[20].mxu1 %vm1083_vm7, %v1648_v21 }
 0x490   : > { %2141 = vmatpush3.bf16.msra.mxu1 %v1765_v3  ;;  %2142 = vmatprep.mubr.msk.bf16.mxu1 %vm2395_vm9, %v2394_v39 }
 0x491   : > { %v1344_v47 = vsel %vm1074_vm3, %v1328_v8, %v1343_v13 }
 0x492   : > { %v1305_v22 = vpop.permute.xlu0 %1304  ;;  %v1345_v23 = vsel %vm1076_vm4, %v1332_v50, %v1344_v47 }
 0x493   : > { %v1336_v26 = vrot.slane %v1305_v22, %v2612_v4 }
 0x495   : > { %v1346_v39 = vsel %vm1078_vm5, %v1336_v26, %v1345_v23 }
 0x496   : > { %v1347_v43 = vsel %vm1080_vm6, %v1340_v14, %v1346_v39 }
 0x497   : > { %1349 = vst.msk [vmem:[%s475_s22] sm:$0xff] %vm1083_vm7, %v1347_v43  ;;  %2143 = vmatmul.mubr.msk.bf16.vlgmr.msra.gmra.mrb[24].mxu1 %vm1083_vm7, %v1760_v63 }
 0x53a   : > { %v1409_v11 = vpop.f32.mrb[0].mxu1 }
 0x53b   : > { %v2102_v40 = vpop.f32.mrb[1].mxu1 }
 0x53c   : > { %v1412_v52 = vpop.f32.mrb[2].mxu1 }
 0x53d   : > { %v2103_v20 = vpop.f32.mrb[3].mxu1 }
 0x542   : > { %v1465_v4 = vpop.f32.mrb[4].mxu1 }
 0x543   : > { %v1815_v45 = vrot.slane %v1465_v4, 7  ;;  %v2108_v0 = vpop.f32.mrb[5].mxu1 }
 0x544   : > { %v1468_v48 = vpop.f32.mrb[6].mxu1 }
 0x545   : > { %v1816_v28 = vsel %vm1068_vm0, %v1815_v45, %v1409_v11  ;;  %v2109_v49 = vpop.f32.mrb[7].mxu1 }
 0x54a   : > { %v1521_v33 = vpop.f32.mrb[8].mxu1 }
 0x54b   : > { %v1817_v44 = vrot.slane %v1521_v33, 6  ;;  %v2114_v5 = vpop.f32.mrb[9].mxu1 }
 0x54c   : > { %v1524_v16 = vpop.f32.mrb[10].mxu1 }
 0x54d   : > { %v1818_v58 = vsel %vm1070_vm1, %v1817_v44, %v1816_v28  ;;  %v2115_v51 = vpop.f32.mrb[11].mxu1 }
 0x552   : > { %v1577_v46 = vpop.f32.mrb[12].mxu1  ;;  %v1745_v1 = vpop.f32.mrb[8].mxu0 }
 0x553   : > { %v1819_v61 = vrot.slane %v1577_v46, 5  ;;  %v2120_v32 = vpop.f32.mrb[13].mxu1  ;;  %v2138_v53 = vpop.f32.mrb[9].mxu0  ;;  %v1825_v31 = vrot.slane %v1745_v1, 2 }
 0x554   : > { %v1580_v12 = vpop.f32.mrb[14].mxu1  ;;  %v1748_v19 = vpop.f32.mrb[10].mxu0 }
 0x555   : > { %v1820_v25 = vsel %vm1072_vm2, %v1819_v61, %v1818_v58  ;;  %v2121_v54 = vpop.f32.mrb[15].mxu1  ;;  %v2139_v56 = vpop.f32.mrb[11].mxu0 }
 0x55a   : > { %v1633_v35 = vpop.f32.mrb[16].mxu1 }
 0x55b   : > { %v1821_v57 = vrot.slane %v1633_v35, 4  ;;  %v2126_v6 = vpop.f32.mrb[17].mxu1 }
 0x55c   : > { %v1636_v59 = vpop.f32.mrb[18].mxu1 }
 0x55d   : > { %v1822_v55 = vsel %vm1074_vm3, %v1821_v57, %v1820_v25  ;;  %v2127_v7 = vpop.f32.mrb[19].mxu1 }
 0x562   : > { %v1689_v36 = vpop.f32.mrb[20].mxu1 }
 0x563   : > { %v1823_v60 = vrot.slane %v1689_v36, 3  ;;  %v2132_v62 = vpop.f32.mrb[21].mxu1 }
 0x564   : > { %v1692_v2 = vpop.f32.mrb[22].mxu1 }
 0x565   : > { %v1824_v15 = vsel %vm1076_vm4, %v1823_v60, %v1822_v55  ;;  %v2133_v37 = vpop.f32.mrb[23].mxu1 }
 0x566   : > { %v1826_v17 = vsel %vm1078_vm5, %v1825_v31, %v1824_v15 }
 0x56a   : > { %v1801_v24 = vpop.f32.mrb[24].mxu1 }
 0x56b   : > { %v1827_v27 = vrot.slane %v1801_v24, 1  ;;  %v2144_v10 = vpop.f32.mrb[25].mxu1 }
 0x56c   : > { %v1804_v18 = vpop.f32.mrb[26].mxu1 }
 0x56d   : > { %v1828_v29 = vsel %vm1080_vm6, %v1827_v27, %v1826_v17  ;;  %v2145_v38 = vpop.f32.mrb[27].mxu1 }
 0x56e   : > { %1830 = vst [vmem:[%s447_s20] sm:$0xff] %v1828_v29 }
 0x56f   : > { %2329 = shalt.err (!%p2326_p2)
}
 0x570   : > { %s2330_s30 = scalar_lea.hbm %s2900_s19, 128  ;;  %s2334_s22 = scalar_lea.hbm %s2954_s9, 256 }
 0x571   : > { %p2331_p5 = scmp.ne.s32.totalorder %s2900_s19, %s2330_s30  ;;  %p2335_p1 = scmp.lt.u32.totalorder %s2900_s19, %s2954_s9 }
 0x572   : > { %p2336_p4 = scmp.lt.u32.totalorder %s2334_s22, %s2330_s30  ;;  %p2338_p8 = scmp.lt.u32.totalorder %s2330_s30, %s2900_s19 }
 0x573   : > { %p2332_p0 = pnand %p2331_p5, %p2546_p12 }
 0x574   : > { %p2337_p6 = por %p2336_p4, %p2335_p1 }
 0x575   : > { %p2333_p11 = pneg %p2332_p0 }
 0x576   : > { %p2339_p10 = por %p2338_p8, %p2337_p6 }
 0x578   : > { %p2340_p13 = pnand %p2339_p10, %p2333_p11 }
 0x57a   : > { %2343 = shalt.err (!%p2340_p13)
}
 0x57b   : > { %2152 = dma.vmem_to_hbm [thread:$0]  (%p2546_p12), %s2902_s11, 128, %s2900_s19, %s1832_s8  }
 0x57c PF: > { %s2975_s28 = sld [smem:[#allocation12_spill]]  ;;  %s1864_s29 = sand.u32 1, %s2374_s15  }
 0x57d   : > { %p2977_p7 = scmp.ge.s32.totalorder %s2386_s18, 2  ;;  %s1865_s12 = scalar_lea.sflag [#allocation5], %s1864_s29 }
 0x582   : > { %p2976_p3 = scmp.ne.s32.totalorder %s2975_s28, 0 }
 0x584   : > { %p2163_p9 = pnand %p2977_p7, %p2976_p3 }
 0x586   : > { %2369 = dma.done.wait (!%p2163_p9), %s1865_s12, 128  }
 0x587   : > { %2371 = vsyncadd (!%p2163_p9), %s1865_s12, 4294967168  ;;  %s2978_s18 = sld [smem:[#allocation13_spill]]  ;;  %s2979_s15 = smov %s2378_s16 }
 0x588   : > { %s2980_s16 = smov %s2382_s17  ;;  %s2981_s17 = smov %s2542_s13 }
 0x58d   : > { %p27_p2 = scmp.ge.s32.totalorder %s2978_s18, 4  }
 0x58f   :  { %29 = sbr.rel (!%p27_p2) target bundleno = 9 (0x9), region = 129 }
 0x596   :  { %1877 = vsyncpa [#allocation4], 1 }
 0x597   :  { %1879 = vsyncpa [#allocation4 + $0x1], 1 }
 0x598   :  { %1880 = vsyncpa [#allocation7], 1 }
 0x599   :  { %1881 = vsyncpa [#allocation5], 1 }
 0x59a   :  { %1883 = vsyncpa [#allocation5 + $0x1], 1 }

</bundles_post_ra>
